<compile_context>
chip_gen: v7x
topology: tpu7x:2x2x1
jax: 0.10.0
libtpu: 0.0.40
codegen_flags: <defaults>
</compile_context>

<pallas_src>
import jax
import jax.numpy as jnp
import numpy as np
from jax import lax
from jax.experimental import pallas as pl
from jax.experimental.pallas import tpu as pltpu


# ----------------------------------------------------------------------------
# Trace-time 0/1 tap indicator shared by the stride-2 conv and its transpose
# ----------------------------------------------------------------------------
def _tap_indicator(H, W):
    """T[a, b, p, o] = 1 iff flat full-res position p = y*W + x with y = 2*oy + a - 1,
    x = 2*ox + b - 1 (in bounds), o = oy*Wo + ox.  Same Toeplitz structure serves both the
    4x4/s2/p1 Conv2d (gather) and the 4x4/s2/p1 ConvTranspose2d (scatter)."""
    Ho, Wo = H // 2, W // 2
    t = np.zeros((4, 4, H * W, Ho * Wo), np.float32)
    for a in range(4):
        for b in range(4):
            for oy in range(Ho):
                y = 2 * oy + a - 1
                if not (0 <= y < H):
                    continue
                for ox in range(Wo):
                    x = 2 * ox + b - 1
                    if 0 <= x < W:
                        t[a, b, y * W + x, oy * Wo + ox] = 1.0
    return jnp.asarray(t)


# ----------------------------------------------------------------------------
# Fused kernel: LeakyReLU -> Conv(4,s2,p1) -> ReLU -> ConvT(4,s2,p1) -> [x | u] write
# ----------------------------------------------------------------------------
def _fused_unet_block_kernel(x_ref, wgd_ref, wgu_ref, o_ref):
    # x_ref  : (Bt, Cin*HW)        f32   batch tile; channels*spatial flattened onto lanes
    # wgd_ref: (Cin*HW, Cm*HoWo)   bf16  down-conv weights with the stride-2 gather folded in
    # wgu_ref: (Cm*HoWo, Cout*HW)  bf16  up-conv weights with the stride-2 scatter folded in
    # o_ref  : (Bt, (Cin+Cout)*HW) f32   [ x (pass-through) | pre-BN ConvTranspose output ]
    x = x_ref[...]
    chw = x_ref.shape[1]

    # LeakyReLU(0.2); leaky(0) == 0 so the implicit zero padding inside wgd stays valid.
    xl = jnp.where(x >= 0, x, 0.2 * x).astype(jnp.bfloat16)

    # Conv2d(4x4, s2, p1): one matmul, M=Bt, K=Cin*HW, N=Cm*HoWo (lane extent % 128 == 0).
    d = jnp.dot(xl, wgd_ref[...], preferred_element_type=jnp.float32)
    dr = jnp.maximum(d, 0.0).astype(jnp.bfloat16)                       # ReLU

    # ConvTranspose2d(4x4, s2, p1): one matmul, M=Bt, K=Cm*HoWo, N=Cout*HW.
    u = jnp.dot(dr, wgu_ref[...], preferred_element_type=jnp.float32)

    # Write the concatenated output directly (both stores 128-aligned, unmasked).
    o_ref[:, :chw] = x.astype(o_ref.dtype)
    o_ref[:, chw:] = u.astype(o_ref.dtype)


# ----------------------------------------------------------------------------
# Full block forward (innermost=True):  out = cat([x, model(x)], dim=1)
# ----------------------------------------------------------------------------
@jax.jit
def hole_predictor_unet_block(x, params):
    n, cin, h, w = x.shape
    assert h % 2 == 0 and w % 2 == 0, "stride-2 4x4/p1 UNet block needs even H, W"
    hw = h * w
    ho, wo = h // 2, w // 2
    howo = ho * wo
    w_down, w_up = params["w_down"], params["w_up"]     # (Cm,Cin,4,4) / (Cm,Cout,4,4) torch
    cm, cout = w_down.shape[0], w_up.shape[1]

    # --- scattered-weight matrices (tiny XLA einsums vs. a compile-time 0/1 indicator) ----
    t = _tap_indicator(h, w)                                             # (4, 4, HW, HoWo)
    wgd = jnp.einsum("abpo,mcab->cpmo", t, w_down).reshape(cin * hw, cm * howo)
    wgu = jnp.einsum("abpo,mcab->mocp", t, w_up).reshape(cm * howo, cout * hw)
    wgd = wgd.astype(jnp.bfloat16)
    wgu = wgu.astype(jnp.bfloat16)

    # --- batch tiling: fold the batch onto M; keep a 'parallel' grid axis over tiles so
    #     larger batches still spread across v7x's two TensorCores (N=2 collapses to 1 step,
    #     where the batch-fold amortisation wins over dual-TC at this problem size). --------
    bt = n if n <= 8 else 8
    if n % bt:
        bt = n                      # fall back to a single full-extent tile
    num_tiles = n // bt

    x2 = x.reshape(n, cin * hw)     # free row-major reshape; channels*spatial on lanes

    buf = pl.pallas_call(
        _fused_unet_block_kernel,
        out_shape=jax.ShapeDtypeStruct((n, (cin + cout) * hw), x.dtype),
        grid=(num_tiles,),
        in_specs=[
            pl.BlockSpec((bt, cin * hw), lambda i: (i, 0)),
            pl.BlockSpec((cin * hw, cm * howo), lambda i: (0, 0)),   # constant -> DMA'd once
            pl.BlockSpec((cm * howo, cout * hw), lambda i: (0, 0)),  # constant -> DMA'd once
        ],
        out_specs=pl.BlockSpec((bt, (cin + cout) * hw), lambda i: (i, 0)),
        compiler_params=pltpu.CompilerParams(dimension_semantics=("parallel",)),
    )(x2, wgd, wgu)

    # --- BatchNorm2d (training-mode batch stats, eps=1e-5) as a few-KB XLA epilogue -------
    buf3 = buf.reshape(n, cin + cout, hw)
    u = buf3[:, cin:, :]
    mean = jnp.mean(u, axis=(0, 2))
    var = jnp.mean(jnp.square(u - mean[None, :, None]), axis=(0, 2))     # two-pass, f32
    scale = params["gamma"] * lax.rsqrt(var + 1e-5)
    shift = params["beta"] - mean * scale
    scale_full = jnp.concatenate([jnp.ones((cin,), buf.dtype), scale.astype(buf.dtype)])
    shift_full = jnp.concatenate([jnp.zeros((cin,), buf.dtype), shift.astype(buf.dtype)])
    out = buf3 * scale_full[None, :, None] + shift_full[None, :, None]
    return out.reshape(n, cin + cout, h, w)


# ----------------------------------------------------------------------------
# Pure-JAX f32 reference (XLA convs at HIGHEST precision) for validation
# ----------------------------------------------------------------------------
def reference(x, params):
    xl = jnp.where(x >= 0, x, 0.2 * x)
    d = lax.conv_general_dilated(
        xl, params["w_down"], window_strides=(2, 2), padding=((1, 1), (1, 1)),
        dimension_numbers=("NCHW", "OIHW", "NCHW"), precision=lax.Precision.HIGHEST)
    dr = jnp.maximum(d, 0.0)
    rhs = jnp.transpose(params["w_up"], (1, 0, 2, 3))[:, :, ::-1, ::-1]
    u = lax.conv_general_dilated(
        dr, rhs, window_strides=(1, 1), padding=((2, 2), (2, 2)),
        lhs_dilation=(2, 2), dimension_numbers=("NCHW", "OIHW", "NCHW"),
        precision=lax.Precision.HIGHEST)
    mean = u.mean(axis=(0, 2, 3), keepdims=True)
    var = ((u - mean) ** 2).mean(axis=(0, 2, 3), keepdims=True)
    gamma = params["gamma"].reshape(1, -1, 1, 1)
    beta = params["beta"].reshape(1, -1, 1, 1)
    y = (u - mean) * lax.rsqrt(var + 1e-5) * gamma + beta
    return jnp.concatenate([x, y], axis=1)


if __name__ == "__main__":
    # module config: outer_nc=4 (=> input_nc=4), inner_nc=8, innermost=True ; NCHW input
    N, C, H, W = 2, 4, 16, 16
    inner_nc = 8

    key = jax.random.PRNGKey(0)
    k1, k2, k3, k4, k5 = jax.random.split(key, 5)
    x = jax.random.normal(k1, (N, C, H, W), jnp.float32)
    params = {
        # Conv2d weight, torch layout (out=inner, in=C, kh, kw)
        "w_down": 0.1 * jax.random.normal(k2, (inner_nc, C, 4, 4), jnp.float32),
        # ConvTranspose2d weight, torch layout (in=inner, out=C, kh, kw)
        "w_up": 0.1 * jax.random.normal(k3, (inner_nc, C, 4, 4), jnp.float32),
        "gamma": 1.0 + 0.1 * jax.random.normal(k4, (C,), jnp.float32),
        "beta": 0.1 * jax.random.normal(k5, (C,), jnp.float32),
    }

    out = jax.block_until_ready(hole_predictor_unet_block(x, params))
    assert out.shape == (N, 2 * C, H, W), out.shape

    ref = jax.block_until_ready(reference(x, params))
    # bf16 MXU operands with f32 accumulation vs. full-f32 reference -> ~1e-2 level diffs
    np.testing.assert_allclose(np.asarray(out), np.asarray(ref), rtol=2e-2, atol=2e-2)

    print("KERNEL_OK")
</pallas_src>

<mosaic_0001>
module attributes {stable_mosaic.version = 11 : i64} {
  func.func @_fused_unet_block_kernel(%arg0: i32, %arg1: memref<2x1024xf32, #tpu.memory_space<vmem>>, %arg2: memref<1024x512xbf16, #tpu.memory_space<vmem>>, %arg3: memref<512x1024xbf16, #tpu.memory_space<vmem>>, %arg4: memref<2x2048xf32, #tpu.memory_space<vmem>>) attributes {dimension_semantics = [#tpu.dimension_semantics<parallel>], iteration_bounds = array<i64: 1>, scalar_prefetch = 0 : i64, scratch_operands = 0 : i64, tpu.core_type = #tpu.core_type<tc>, window_params = [{transform_indices = @transform_0, window_bounds = array<i64: 2, 1024>}, {pipeline_mode = #tpu.pipeline_mode<synchronous>, transform_indices = @transform_1, window_bounds = array<i64: 1024, 512>}, {pipeline_mode = #tpu.pipeline_mode<synchronous>, transform_indices = @transform_2, window_bounds = array<i64: 512, 1024>}, {transform_indices = @transform_3, window_bounds = array<i64: 2, 2048>}]} {
    %c0 = arith.constant 0 : index
    %c0_0 = arith.constant 0 : index
    %0 = vector.load %arg1[%c0, %c0_0] : memref<2x1024xf32, #tpu.memory_space<vmem>>, vector<2x1024xf32>
    %cst = arith.constant 0.000000e+00 : f32
    %1 = vector.broadcast %cst : f32 to vector<2x1024xf32>
    %2 = arith.cmpf oge, %0, %1 : vector<2x1024xf32>
    %cst_1 = arith.constant 2.000000e-01 : f32
    %3 = vector.broadcast %cst_1 : f32 to vector<2x1024xf32>
    %4 = arith.mulf %3, %0 : vector<2x1024xf32>
    %5 = arith.select %2, %0, %4 : vector<2x1024xi1>, vector<2x1024xf32>
    %6 = arith.truncf %5 : vector<2x1024xf32> to vector<2x1024xbf16>
    %c0_2 = arith.constant 0 : index
    %c0_3 = arith.constant 0 : index
    %7 = vector.load %arg2[%c0_2, %c0_3] : memref<1024x512xbf16, #tpu.memory_space<vmem>>, vector<1024x512xbf16>
    %cst_4 = arith.constant dense<0.000000e+00> : vector<2x512xf32>
    %8 = tpu.matmul %6, %7, %cst_4 {dimension_numbers = #tpu.dot_dimension_numbers<[1], [0], [0], [1], [0, 0, 1, 1], [], []>} : vector<2x1024xbf16>, vector<1024x512xbf16>, vector<2x512xf32> -> vector<2x512xf32>
    %cst_5 = arith.constant 0.000000e+00 : f32
    %9 = vector.broadcast %cst_5 : f32 to vector<2x512xf32>
    %10 = arith.maximumf %8, %9 : vector<2x512xf32>
    %11 = arith.truncf %10 : vector<2x512xf32> to vector<2x512xbf16>
    %c0_6 = arith.constant 0 : index
    %c0_7 = arith.constant 0 : index
    %12 = vector.load %arg3[%c0_6, %c0_7] : memref<512x1024xbf16, #tpu.memory_space<vmem>>, vector<512x1024xbf16>
    %cst_8 = arith.constant dense<0.000000e+00> : vector<2x1024xf32>
    %13 = tpu.matmul %11, %12, %cst_8 {dimension_numbers = #tpu.dot_dimension_numbers<[1], [0], [0], [1], [0, 0, 1, 1], [], []>} : vector<2x512xbf16>, vector<512x1024xbf16>, vector<2x1024xf32> -> vector<2x1024xf32>
    %c0_9 = arith.constant 0 : index
    %c0_10 = arith.constant 0 : index
    %14 = vector.load %arg4[%c0_9, %c0_10] : memref<2x2048xf32, #tpu.memory_space<vmem>>, vector<2x1024xf32>
    tpu.vector_store %arg4[%c0_9, %c0_10], %0 {strides = array<i32>} : memref<2x2048xf32, #tpu.memory_space<vmem>>, vector<2x1024xf32>,
    %c0_11 = arith.constant 0 : index
    %c1024 = arith.constant 1024 : index
    %15 = vector.load %arg4[%c0_11, %c1024] : memref<2x2048xf32, #tpu.memory_space<vmem>>, vector<2x1024xf32>
    tpu.vector_store %arg4[%c0_11, %c1024], %13 {strides = array<i32>} : memref<2x2048xf32, #tpu.memory_space<vmem>>, vector<2x1024xf32>,
    return
  }
  func.func @transform_0(%arg0: i32) -> (i32, i32) {
    %c0_i32 = arith.constant 0 : i32
    %c0_i32_0 = arith.constant 0 : i32
    return %arg0, %c0_i32 : i32, i32
  }
  func.func @transform_1(%arg0: i32) -> (i32, i32) {
    %c0_i32 = arith.constant 0 : i32
    %c0_i32_0 = arith.constant 0 : i32
    %c0_i32_1 = arith.constant 0 : i32
    return %c0_i32, %c0_i32_0 : i32, i32
  }
  func.func @transform_2(%arg0: i32) -> (i32, i32) {
    %c0_i32 = arith.constant 0 : i32
    %c0_i32_0 = arith.constant 0 : i32
    %c0_i32_1 = arith.constant 0 : i32
    return %c0_i32, %c0_i32_0 : i32, i32
  }
  func.func @transform_3(%arg0: i32) -> (i32, i32) {
    %c0_i32 = arith.constant 0 : i32
    %c0_i32_0 = arith.constant 0 : i32
    return %arg0, %c0_i32 : i32, i32
  }
}

</mosaic_0001>

<bundles_post_ra>
// kernel: hole_predictor_unet_block.1
= control target key start
LH: loop header
LB: loop body
LE: loop exit
PB: predicated region body
PF: predicated region fallthrough
CT: control target
= control target key end

     0   :  { %v4799_v38 = vmov 1983009808   ;;  %v28_v40 = vlaneseq  ;;  %s6446_s1 = inlined_call_operand.vmem [shape: bf16[1024,512], index: 1, kind: input, shape index: {}]   ;;  %s6447_s0 = inlined_call_operand.vmem [shape: f32[2,1024], index: 0, kind: input, shape index: {}]   ;;  %s6448_s2 = inlined_call_operand.vmem [shape: bf16[512,1024], index: 2, kind: input, shape index: {}]   ;;  %s6449_s3 = inlined_call_operand.vmem [shape: f32[2,2048], index: 3, kind: output, shape index: {}]  }
   0x1   :  { %v4415_v0 = vld [vmem:[%s6446_s1 + $0x4] ss:$16 sps:$4 sm:$0xff]   ;;  %v4417_v1 = vld [vmem:[%s6446_s1 + $0xc] ss:$16 sps:$4 sm:$0xff]   ;;  %v4419_v2 = vld [vmem:[%s6446_s1] ss:$16 sps:$4 sm:$0xff]   ;;  %v26_v39 = vunpack.c.l.s4 %v4799_v38 }
   0x2   :  { %1610 = vmatprep.subr.bf16.mxu0 %v4415_v0  ;;  %v4420_v3 = vld [vmem:[%s6446_s1 + $0x8] ss:$16 sps:$4 sm:$0xff]   ;;  %1774 = vmatprep.subr.bf16.mxu1 %v4417_v1  ;;  %v4421_v4 = vld [vmem:[%s6446_s1 + $0x24] ss:$16 sps:$4 sm:$0xff]   ;;  %v4423_v5 = vld [vmem:[%s6446_s1 + $0x2c] ss:$16 sps:$4 sm:$0xff]  }
   0x3   :  { %1611 = vmatpush1.bf16.msra.mxu0 %v4419_v2  ;;  %1775 = vmatpush1.bf16.msra.mxu1 %v4420_v3  ;;  %v4425_v6 = vld [vmem:[%s6446_s1 + $0x20] ss:$16 sps:$4 sm:$0xff]   ;;  %v4426_v7 = vld [vmem:[%s6446_s1 + $0x28] ss:$16 sps:$4 sm:$0xff]   ;;  %v4427_v8 = vld [vmem:[%s6446_s1 + $0x44] ss:$16 sps:$4 sm:$0xff]   ;;  %v27_v45 = vunpack.c.0.s8 %v26_v39 }
   0x4   :  { %1612 = vmatprep.subr.bf16.mxu0 %v4421_v4  ;;  %1776 = vmatprep.subr.bf16.mxu1 %v4423_v5  ;;  %v4429_v9 = vld [vmem:[%s6446_s1 + $0x4c] ss:$16 sps:$4 sm:$0xff]   ;;  %v4431_v10 = vld [vmem:[%s6446_s1 + $0x40] ss:$16 sps:$4 sm:$0xff]   ;;  %v4432_v11 = vld [vmem:[%s6446_s1 + $0x48] ss:$16 sps:$4 sm:$0xff]  }
   0x5   :  { %v4433_v12 = vld [vmem:[%s6446_s1 + $0x64] ss:$16 sps:$4 sm:$0xff]   ;;  %v4435_v13 = vld [vmem:[%s6446_s1 + $0x6c] ss:$16 sps:$4 sm:$0xff]   ;;  %v4437_v14 = vld [vmem:[%s6446_s1 + $0x60] ss:$16 sps:$4 sm:$0xff]  }
   0x6   :  { %v4438_v15 = vld [vmem:[%s6446_s1 + $0x68] ss:$16 sps:$4 sm:$0xff]   ;;  %v4439_v16 = vld [vmem:[%s6446_s1 + $0x84] ss:$16 sps:$4 sm:$0xff]   ;;  %v4441_v17 = vld [vmem:[%s6446_s1 + $0x8c] ss:$16 sps:$4 sm:$0xff]  }
   0x7   :  { %1613 = vmatpush1.bf16.msra.mxu0 %v4425_v6  ;;  %1777 = vmatpush1.bf16.msra.mxu1 %v4426_v7  ;;  %v4443_v18 = vld [vmem:[%s6446_s1 + $0x80] ss:$16 sps:$4 sm:$0xff]   ;;  %v4444_v19 = vld [vmem:[%s6446_s1 + $0x88] ss:$16 sps:$4 sm:$0xff]   ;;  %v4445_v20 = vld [vmem:[%s6446_s1 + $0xa4] ss:$16 sps:$4 sm:$0xff]  }
   0x8   :  { %1614 = vmatprep.subr.bf16.mxu0 %v4427_v8  ;;  %1778 = vmatprep.subr.bf16.mxu1 %v4429_v9  ;;  %v4447_v21 = vld [vmem:[%s6446_s1 + $0xac] ss:$16 sps:$4 sm:$0xff]   ;;  %v4449_v22 = vld [vmem:[%s6446_s1 + $0xa0] ss:$16 sps:$4 sm:$0xff]   ;;  %v4450_v23 = vld [vmem:[%s6446_s1 + $0xa8] ss:$16 sps:$4 sm:$0xff]  }
   0x9   :  { %v4451_v24 = vld [vmem:[%s6446_s1 + $0xc4] ss:$16 sps:$4 sm:$0xff]   ;;  %v4453_v25 = vld [vmem:[%s6446_s1 + $0xcc] ss:$16 sps:$4 sm:$0xff]   ;;  %v4455_v26 = vld [vmem:[%s6446_s1 + $0xc0] ss:$16 sps:$4 sm:$0xff]  }
   0xa   :  { %v4456_v27 = vld [vmem:[%s6446_s1 + $0xc8] ss:$16 sps:$4 sm:$0xff]   ;;  %v4457_v28 = vld [vmem:[%s6446_s1 + $0xe4] ss:$16 sps:$4 sm:$0xff]   ;;  %v4459_v29 = vld [vmem:[%s6446_s1 + $0xec] ss:$16 sps:$4 sm:$0xff]  }
   0xb   :  { %1615 = vmatpush1.bf16.msra.mxu0 %v4431_v10  ;;  %1779 = vmatpush1.bf16.msra.mxu1 %v4432_v11  ;;  %v4461_v30 = vld [vmem:[%s6446_s1 + $0xe0] ss:$16 sps:$4 sm:$0xff]   ;;  %v4462_v31 = vld [vmem:[%s6446_s1 + $0xe8] ss:$16 sps:$4 sm:$0xff]   ;;  %v4463_v32 = vld [vmem:[%s6446_s1 + $0x104] ss:$16 sps:$4 sm:$0xff]  }
   0xc   :  { %1616 = vmatprep.subr.bf16.mxu0 %v4433_v12  ;;  %1780 = vmatprep.subr.bf16.mxu1 %v4435_v13  ;;  %v4465_v33 = vld [vmem:[%s6446_s1 + $0x10c] ss:$16 sps:$4 sm:$0xff]   ;;  %v4467_v34 = vld [vmem:[%s6446_s1 + $0x100] ss:$16 sps:$4 sm:$0xff]   ;;  %v4468_v35 = vld [vmem:[%s6446_s1 + $0x108] ss:$16 sps:$4 sm:$0xff]  }
   0xd   :  { %v4469_v36 = vld [vmem:[%s6446_s1 + $0x124] ss:$16 sps:$4 sm:$0xff]   ;;  %v4471_v37 = vld [vmem:[%s6446_s1 + $0x12c] ss:$16 sps:$4 sm:$0xff]   ;;  %v4473_v41 = vld [vmem:[%s6446_s1 + $0x120] ss:$16 sps:$4 sm:$0xff]  }
   0xe   :  { %v4474_v42 = vld [vmem:[%s6446_s1 + $0x128] ss:$16 sps:$4 sm:$0xff]   ;;  %v4475_v43 = vld [vmem:[%s6446_s1 + $0x144] ss:$16 sps:$4 sm:$0xff]   ;;  %v4477_v44 = vld [vmem:[%s6446_s1 + $0x14c] ss:$16 sps:$4 sm:$0xff]  }
   0xf   :  { %1617 = vmatpush1.bf16.msra.mxu0 %v4437_v14  ;;  %1781 = vmatpush1.bf16.msra.mxu1 %v4438_v15  ;;  %v29_v46 = vshrl.u32 %v28_v40, 7  ;;  %v4479_v47 = vld [vmem:[%s6446_s1 + $0x140] ss:$16 sps:$4 sm:$0xff]   ;;  %v4480_v48 = vld [vmem:[%s6446_s1 + $0x148] ss:$16 sps:$4 sm:$0xff]  }
  0x10   :  { %1618 = vmatprep.subr.bf16.mxu0 %v4439_v16  ;;  %1782 = vmatprep.subr.bf16.mxu1 %v4441_v17  ;;  %v4481_v49 = vld [vmem:[%s6446_s1 + $0x164] ss:$16 sps:$4 sm:$0xff]   ;;  %v4483_v50 = vld [vmem:[%s6446_s1 + $0x16c] ss:$16 sps:$4 sm:$0xff]   ;;  %v4485_v54 = vld [vmem:[%s6446_s1 + $0x160] ss:$16 sps:$4 sm:$0xff]  }
  0x11   :  { %v4961_v51 = vld [vmem:[%s6447_s0] sm:$0xff]  ;;  %v4963_v52 = vsub.s32 %v27_v45, %v29_v46  ;;  %v4486_v55 = vld [vmem:[%s6446_s1 + $0x168] ss:$16 sps:$4 sm:$0xff]   ;;  %v4489_v57 = vld [vmem:[%s6446_s1 + $0x18c] ss:$16 sps:$4 sm:$0xff]  }
  0x12   :  { %vm16_vm0 = vcmp.ge.f32.partialorder %v4961_v51, 0.0  ;;  %v18_v53 = vmul.f32 0.2, %v4961_v51  ;;  %v4487_v56 = vld [vmem:[%s6446_s1 + $0x184] ss:$16 sps:$4 sm:$0xff]   ;;  %3810 = vst [vmem:[%s6449_s3] sm:$0xff] %v4961_v51 }
  0x13   :  { %1619 = vmatpush1.bf16.msra.mxu0 %v4443_v18  ;;  %1783 = vmatpush1.bf16.msra.mxu1 %v4444_v19  ;;  %v4491_v60 = vld [vmem:[%s6446_s1 + $0x180] ss:$16 sps:$4 sm:$0xff]   ;;  %v4492_v61 = vld [vmem:[%s6446_s1 + $0x188] ss:$16 sps:$4 sm:$0xff]   ;;  %v4493_v63 = vld [vmem:[%s6446_s1 + $0x1a4] ss:$16 sps:$4 sm:$0xff]  }
  0x14   :  { %1620 = vmatprep.subr.bf16.mxu0 %v4445_v20  ;;  %1784 = vmatprep.subr.bf16.mxu1 %v4447_v21  ;;  %v20_v58 = vsel %vm16_vm0, %v4961_v51, %v18_v53  ;;  %v4495_v0 = vld [vmem:[%s6446_s1 + $0x1ac] ss:$16 sps:$4 sm:$0xff]   ;;  %v4497_v2 = vld [vmem:[%s6446_s1 + $0x1a0] ss:$16 sps:$4 sm:$0xff]   ;;  %v4498_v3 = vld [vmem:[%s6446_s1 + $0x1a8] ss:$16 sps:$4 sm:$0xff]  }
  0x15   :  { %v31_v59 = vrot.slane %v20_v58, %v4963_v52  ;;  %v4499_v4 = vld [vmem:[%s6446_s1 + $0x1c4] ss:$16 sps:$4 sm:$0xff]   ;;  %v4501_v5 = vld [vmem:[%s6446_s1 + $0x1cc] ss:$16 sps:$4 sm:$0xff]   ;;  %v24_v6 = vcombine.high %v20_v58, %v20_v58  ;;  %v4503_v7 = vld [vmem:[%s6446_s1 + $0x1c0] ss:$16 sps:$4 sm:$0xff]  }
  0x16   :  { %v4504_v8 = vld [vmem:[%s6446_s1 + $0x1c8] ss:$16 sps:$4 sm:$0xff]   ;;  %v4505_v9 = vld [vmem:[%s6446_s1 + $0x1e4] ss:$16 sps:$4 sm:$0xff]   ;;  %v4507_v10 = vld [vmem:[%s6446_s1 + $0x1ec] ss:$16 sps:$4 sm:$0xff]  }
  0x17   :  { %1621 = vmatpush1.bf16.msra.mxu0 %v4449_v22  ;;  %1785 = vmatpush1.bf16.msra.mxu1 %v4450_v23  ;;  %v39_v62 = vcombine.high %v31_v59, %v31_v59  ;;  %v5018_v11 = vrot.slane %v24_v6, %v4963_v52  ;;  %v4509_v12 = vld [vmem:[%s6446_s1 + $0x1e0] ss:$16 sps:$4 sm:$0xff]   ;;  %v4510_v13 = vld [vmem:[%s6446_s1 + $0x1e8] ss:$16 sps:$4 sm:$0xff]   ;;  %v4513_v14 = vld [vmem:[%s6446_s1 + $0x204] ss:$16 sps:$4 sm:$0xff]   ;;  %v66_v17 = vpack.c.bf16 %v31_v59, %v31_v59 }
  0x18   :  { %1622 = vmatprep.subr.bf16.mxu0 %v4451_v24  ;;  %1786 = vmatprep.subr.bf16.mxu1 %v4453_v25  ;;  %v4516_v15 = vld [vmem:[%s6446_s1 + $0x20c] ss:$16 sps:$4 sm:$0xff]   ;;  %v4511_v18 = vld [vmem:[%s6446_s1 + $0x200] ss:$16 sps:$4 sm:$0xff]   ;;  %v4514_v19 = vld [vmem:[%s6446_s1 + $0x208] ss:$16 sps:$4 sm:$0xff]  }
  0x19   :  { %v67_v1 = vpack.c.bf16 %v39_v62, %v39_v62  ;;  %v40_v16 = vcombine.high %v5018_v11, %v5018_v11  ;;  %v4519_v20 = vld [vmem:[%s6446_s1 + $0x224] ss:$16 sps:$4 sm:$0xff]   ;;  %v4522_v21 = vld [vmem:[%s6446_s1 + $0x22c] ss:$16 sps:$4 sm:$0xff]   ;;  %v4517_v23 = vld [vmem:[%s6446_s1 + $0x220] ss:$16 sps:$4 sm:$0xff]  }
  0x1a   :  { %v4520_v24 = vld [vmem:[%s6446_s1 + $0x228] ss:$16 sps:$4 sm:$0xff]   ;;  %v4525_v25 = vld [vmem:[%s6446_s1 + $0x244] ss:$16 sps:$4 sm:$0xff]   ;;  %v4546_v38 = vld [vmem:[%s6446_s1 + $0x2ac] ss:$16 sps:$4 sm:$0xff]  }
  0x1b   :  { %1623 = vmatpush1.bf16.msra.mxu0 %v4455_v26  ;;  %1787 = vmatpush1.bf16.msra.mxu1 %v4456_v27  ;;  %v69_v22 = vpack.c.bf16 %v40_v16, %v40_v16  ;;  %v4528_v26 = vld [vmem:[%s6446_s1 + $0x24c] ss:$16 sps:$4 sm:$0xff]   ;;  %v4523_v27 = vld [vmem:[%s6446_s1 + $0x240] ss:$16 sps:$4 sm:$0xff]   ;;  %v4544_v40 = vld [vmem:[%s6446_s1 + $0x2a8] ss:$16 sps:$4 sm:$0xff]  }
  0x1c   :  { %1624 = vmatprep.subr.bf16.mxu0 %v4457_v28  ;;  %1788 = vmatprep.subr.bf16.mxu1 %v4459_v29  ;;  %v4526_v28 = vld [vmem:[%s6446_s1 + $0x248] ss:$16 sps:$4 sm:$0xff]   ;;  %v4531_v29 = vld [vmem:[%s6446_s1 + $0x264] ss:$16 sps:$4 sm:$0xff]   ;;  %v4541_v39 = vld [vmem:[%s6446_s1 + $0x2a0] ss:$16 sps:$4 sm:$0xff]  }
  0x1d   :  { %1642 = vmatprep.mubr.bf16.mxu0 %v67_v1  ;;  %1806 = vmatprep.mubr.bf16.mxu1 %v67_v1  ;;  %v4555_v45 = vld [vmem:[%s6446_s1 + $0x2e4] ss:$16 sps:$4 sm:$0xff]   ;;  %v4558_v46 = vld [vmem:[%s6446_s1 + $0x2ec] ss:$16 sps:$4 sm:$0xff]   ;;  %v4559_v53 = vld [vmem:[%s6446_s1 + $0x300] ss:$16 sps:$4 sm:$0xff]  }
  0x1e   :  { %v4568_v58 = vld [vmem:[%s6446_s1 + $0x328] ss:$16 sps:$4 sm:$0xff]   ;;  %v4573_v59 = vld [vmem:[%s6446_s1 + $0x344] ss:$16 sps:$4 sm:$0xff]   ;;  %v4577_v1 = vld [vmem:[%s6446_s1 + $0x360] ss:$16 sps:$4 sm:$0xff]  }
  0x1f   :  { %1625 = vmatpush1.bf16.msra.mxu0 %v4461_v30  ;;  %1789 = vmatpush1.bf16.msra.mxu1 %v4462_v31  ;;  %v4534_v30 = vld [vmem:[%s6446_s1 + $0x26c] ss:$16 sps:$4 sm:$0xff]   ;;  %v4529_v31 = vld [vmem:[%s6446_s1 + $0x260] ss:$16 sps:$4 sm:$0xff]   ;;  %v4574_v62 = vld [vmem:[%s6446_s1 + $0x348] ss:$16 sps:$4 sm:$0xff]  }
  0x20   :  { %1626 = vmatprep.subr.bf16.mxu0 %v4463_v32  ;;  %1790 = vmatprep.subr.bf16.mxu1 %v4465_v33  ;;  %v4532_v32 = vld [vmem:[%s6446_s1 + $0x268] ss:$16 sps:$4 sm:$0xff]   ;;  %v4537_v33 = vld [vmem:[%s6446_s1 + $0x284] ss:$16 sps:$4 sm:$0xff]   ;;  %v4583_v6 = vld [vmem:[%s6446_s1 + $0x380] ss:$16 sps:$4 sm:$0xff]  }
  0x21   :  { %v2152_v51 = vld [vmem:[%s6448_s2 + $0x670] sm:$0xff] }
  0x23   :  { %1627 = vmatpush1.bf16.msra.mxu0 %v4467_v34  ;;  %1791 = vmatpush1.bf16.msra.mxu1 %v4468_v35  ;;  %v4540_v34 = vld [vmem:[%s6446_s1 + $0x28c] ss:$16 sps:$4 sm:$0xff]   ;;  %v4535_v35 = vld [vmem:[%s6446_s1 + $0x280] ss:$16 sps:$4 sm:$0xff]  }
  0x24   :  { %1628 = vmatprep.subr.bf16.mxu0 %v4469_v36  ;;  %1792 = vmatprep.subr.bf16.mxu1 %v4471_v37  ;;  %v4538_v36 = vld [vmem:[%s6446_s1 + $0x288] ss:$16 sps:$4 sm:$0xff]   ;;  %v4543_v37 = vld [vmem:[%s6446_s1 + $0x2a4] ss:$16 sps:$4 sm:$0xff]  }
  0x27   :  { %1629 = vmatpush1.bf16.msra.mxu0 %v4473_v41  ;;  %1793 = vmatpush1.bf16.msra.mxu1 %v4474_v42  ;;  %v4549_v41 = vld [vmem:[%s6446_s1 + $0x2c4] ss:$16 sps:$4 sm:$0xff]   ;;  %v4552_v42 = vld [vmem:[%s6446_s1 + $0x2cc] ss:$16 sps:$4 sm:$0xff]  }
  0x28   :  { %1630 = vmatprep.subr.bf16.mxu0 %v4475_v43  ;;  %1794 = vmatprep.subr.bf16.mxu1 %v4477_v44  ;;  %v4547_v43 = vld [vmem:[%s6446_s1 + $0x2c0] ss:$16 sps:$4 sm:$0xff]   ;;  %v4550_v44 = vld [vmem:[%s6446_s1 + $0x2c8] ss:$16 sps:$4 sm:$0xff]  }
  0x2b   :  { %1631 = vmatpush1.bf16.msra.mxu0 %v4479_v47  ;;  %1795 = vmatpush1.bf16.msra.mxu1 %v4480_v48  ;;  %v4553_v47 = vld [vmem:[%s6446_s1 + $0x2e0] ss:$16 sps:$4 sm:$0xff]   ;;  %v4556_v48 = vld [vmem:[%s6446_s1 + $0x2e8] ss:$16 sps:$4 sm:$0xff]  }
  0x2c   :  { %1632 = vmatprep.subr.bf16.mxu0 %v4481_v49  ;;  %1796 = vmatprep.subr.bf16.mxu1 %v4483_v50  ;;  %v4561_v49 = vld [vmem:[%s6446_s1 + $0x304] ss:$16 sps:$4 sm:$0xff]   ;;  %v4564_v50 = vld [vmem:[%s6446_s1 + $0x30c] ss:$16 sps:$4 sm:$0xff]  }
  0x2f   :  { %1633 = vmatpush1.bf16.msra.mxu0 %v4485_v54  ;;  %1797 = vmatpush1.bf16.msra.mxu1 %v4486_v55  ;;  %v4562_v54 = vld [vmem:[%s6446_s1 + $0x308] ss:$16 sps:$4 sm:$0xff]   ;;  %v4567_v55 = vld [vmem:[%s6446_s1 + $0x324] ss:$16 sps:$4 sm:$0xff]  }
  0x30   :  { %1634 = vmatprep.subr.bf16.mxu0 %v4487_v56  ;;  %1798 = vmatprep.subr.bf16.mxu1 %v4489_v57  ;;  %v4570_v56 = vld [vmem:[%s6446_s1 + $0x32c] ss:$16 sps:$4 sm:$0xff]   ;;  %v4565_v57 = vld [vmem:[%s6446_s1 + $0x320] ss:$16 sps:$4 sm:$0xff]  }
  0x33   :  { %1635 = vmatpush1.bf16.msra.mxu0 %v4491_v60  ;;  %1799 = vmatpush1.bf16.msra.mxu1 %v4492_v61  ;;  %v4576_v60 = vld [vmem:[%s6446_s1 + $0x34c] ss:$16 sps:$4 sm:$0xff]   ;;  %v4571_v61 = vld [vmem:[%s6446_s1 + $0x340] ss:$16 sps:$4 sm:$0xff]  }
  0x34   :  { %1636 = vmatprep.subr.bf16.mxu0 %v4493_v63  ;;  %1800 = vmatprep.subr.bf16.mxu1 %v4495_v0  ;;  %v4579_v63 = vld [vmem:[%s6446_s1 + $0x364] ss:$16 sps:$4 sm:$0xff]   ;;  %v4582_v0 = vld [vmem:[%s6446_s1 + $0x36c] ss:$16 sps:$4 sm:$0xff]  }
  0x37   :  { %1637 = vmatpush1.bf16.msra.mxu0 %v4497_v2  ;;  %1801 = vmatpush1.bf16.msra.mxu1 %v4498_v3  ;;  %v4580_v2 = vld [vmem:[%s6446_s1 + $0x368] ss:$16 sps:$4 sm:$0xff]   ;;  %v4585_v3 = vld [vmem:[%s6446_s1 + $0x384] ss:$16 sps:$4 sm:$0xff]  }
  0x38   :  { %1638 = vmatprep.subr.bf16.mxu0 %v4499_v4  ;;  %1802 = vmatprep.subr.bf16.mxu1 %v4501_v5  ;;  %v4588_v4 = vld [vmem:[%s6446_s1 + $0x38c] ss:$16 sps:$4 sm:$0xff]  }
  0x39   :  { %v5181_v5 = vld [vmem:[%s6447_s0 + $0x8] sm:$0xff] }
  0x3a   :  { %vm17_vm1 = vcmp.ge.f32.partialorder %v5181_v5, 0.0  ;;  %3811 = vst [vmem:[%s6449_s3 + $0x8] sm:$0xff] %v5181_v5 }
  0x3b   :  { %1639 = vmatpush1.bf16.msra.mxu0 %v4503_v7  ;;  %1803 = vmatpush1.bf16.msra.mxu1 %v4504_v8  ;;  %v4586_v7 = vld [vmem:[%s6446_s1 + $0x388] ss:$16 sps:$4 sm:$0xff]   ;;  %v4591_v8 = vld [vmem:[%s6446_s1 + $0x3a4] ss:$16 sps:$4 sm:$0xff]  }
  0x3c   :  { %1640 = vmatprep.subr.bf16.mxu0 %v4505_v9  ;;  %1804 = vmatprep.subr.bf16.mxu1 %v4507_v10  ;;  %v4594_v9 = vld [vmem:[%s6446_s1 + $0x3ac] ss:$16 sps:$4 sm:$0xff]   ;;  %v19_v10 = vmul.f32 0.2, %v5181_v5 }
  0x3e   :  { %v5210_v16 = vsel %vm17_vm1, %v5181_v5, %v19_v10  ;;  %v4678_v10 = vld [vmem:[%s6446_s1 + $0x56c] ss:$16 sps:$4 sm:$0xff]  }
  0x3f   :  { %1641 = vmatpush1.bf16.msra.mxu0 %v4509_v12  ;;  %1805 = vmatpush1.bf16.msra.mxu1 %v4510_v13  ;;  %v4589_v12 = vld [vmem:[%s6446_s1 + $0x3a0] ss:$16 sps:$4 sm:$0xff]   ;;  %v4592_v13 = vld [vmem:[%s6446_s1 + $0x3a8] ss:$16 sps:$4 sm:$0xff]  }
  0x40   :  { %1651 = vmatprep.subr.bf16.mxu0 %v4513_v14  ;;  %1815 = vmatprep.subr.bf16.mxu1 %v4516_v15  ;;  %v4597_v14 = vld [vmem:[%s6446_s1 + $0x3c4] ss:$16 sps:$4 sm:$0xff]   ;;  %v4600_v15 = vld [vmem:[%s6446_s1 + $0x3cc] ss:$16 sps:$4 sm:$0xff]  }
  0x41   :  { %v2149_v5 = vld [vmem:[%s6448_s2 + $0x658] sm:$0xff] }
  0x42   :  { %1643 = vmatmul.mubr.bf16.vlgmr.msra.gmra.mrb[0].mxu0 %v66_v17  ;;  %1807 = vmatmul.mubr.bf16.vlgmr.msra.gmra.mrb[0].mxu1 %v66_v17  ;;  %v4595_v17 = vld [vmem:[%s6446_s1 + $0x3c0] ss:$16 sps:$4 sm:$0xff]  }
  0x43   :  { %1652 = vmatpush1.bf16.msra.mxu0 %v4511_v18  ;;  %1816 = vmatpush1.bf16.msra.mxu1 %v4514_v19  ;;  %v4598_v18 = vld [vmem:[%s6446_s1 + $0x3c8] ss:$16 sps:$4 sm:$0xff]   ;;  %v4603_v19 = vld [vmem:[%s6446_s1 + $0x3e4] ss:$16 sps:$4 sm:$0xff]  }
  0x44   :  { %1653 = vmatprep.subr.bf16.mxu0 %v4519_v20  ;;  %1817 = vmatprep.subr.bf16.mxu1 %v4522_v21  ;;  %v4606_v20 = vld [vmem:[%s6446_s1 + $0x3ec] ss:$16 sps:$4 sm:$0xff]   ;;  %v5226_v21 = vrot.slane %v5210_v16, %v4963_v52 }
  0x45   :  { %1683 = vmatprep.mubr.bf16.mxu0 %v69_v22  ;;  %1847 = vmatprep.mubr.bf16.mxu1 %v69_v22  ;;  %v4601_v22 = vld [vmem:[%s6446_s1 + $0x3e0] ss:$16 sps:$4 sm:$0xff]  }
  0x47   :  { %1654 = vmatpush1.bf16.msra.mxu0 %v4517_v23  ;;  %1818 = vmatpush1.bf16.msra.mxu1 %v4520_v24  ;;  %v4604_v23 = vld [vmem:[%s6446_s1 + $0x3e8] ss:$16 sps:$4 sm:$0xff]   ;;  %v4609_v24 = vld [vmem:[%s6446_s1 + $0x404] ss:$16 sps:$4 sm:$0xff]  }
  0x48   :  { %1655 = vmatprep.subr.bf16.mxu0 %v4525_v25  ;;  %1819 = vmatprep.subr.bf16.mxu1 %v4528_v26  ;;  %v4612_v25 = vld [vmem:[%s6446_s1 + $0x40c] ss:$16 sps:$4 sm:$0xff]   ;;  %v56_v26 = vcombine.high %v5226_v21, %v5226_v21 }
  0x4b   :  { %1656 = vmatpush1.bf16.msra.mxu0 %v4523_v27  ;;  %1820 = vmatpush1.bf16.msra.mxu1 %v4526_v28  ;;  %v68_v27 = vpack.c.bf16 %v5018_v11, %v5018_v11  ;;  %v4607_v28 = vld [vmem:[%s6446_s1 + $0x400] ss:$16 sps:$4 sm:$0xff]   ;;  %v4618_v11 = vld [vmem:[%s6446_s1 + $0x42c] ss:$16 sps:$4 sm:$0xff]  }
  0x4c   :  { %1657 = vmatprep.subr.bf16.mxu0 %v4531_v29  ;;  %1821 = vmatprep.subr.bf16.mxu1 %v4534_v30  ;;  %v4610_v29 = vld [vmem:[%s6446_s1 + $0x408] ss:$16 sps:$4 sm:$0xff]   ;;  %v4615_v30 = vld [vmem:[%s6446_s1 + $0x424] ss:$16 sps:$4 sm:$0xff]  }
  0x4f   :  { %1658 = vmatpush1.bf16.msra.mxu0 %v4529_v31  ;;  %1822 = vmatpush1.bf16.msra.mxu1 %v4532_v32  ;;  %v71_v31 = vpack.c.bf16 %v56_v26, %v56_v26  ;;  %v4613_v32 = vld [vmem:[%s6446_s1 + $0x420] ss:$16 sps:$4 sm:$0xff]   ;;  %v41_v26 = vcombine.high %v5210_v16, %v5210_v16  ;;  %v4702_v16 = vld [vmem:[%s6446_s1 + $0x5ec] ss:$16 sps:$4 sm:$0xff]  }
  0x50   :  { %1659 = vmatprep.subr.bf16.mxu0 %v4537_v33  ;;  %1823 = vmatprep.subr.bf16.mxu1 %v4540_v34  ;;  %v4616_v33 = vld [vmem:[%s6446_s1 + $0x428] ss:$16 sps:$4 sm:$0xff]   ;;  %v4621_v34 = vld [vmem:[%s6446_s1 + $0x444] ss:$16 sps:$4 sm:$0xff]  }
  0x53   :  { %1660 = vmatpush1.bf16.msra.mxu0 %v4535_v35  ;;  %1824 = vmatpush1.bf16.msra.mxu1 %v4538_v36  ;;  %v4624_v35 = vld [vmem:[%s6446_s1 + $0x44c] ss:$16 sps:$4 sm:$0xff]   ;;  %v4619_v36 = vld [vmem:[%s6446_s1 + $0x440] ss:$16 sps:$4 sm:$0xff]  }
  0x54   :  { %1661 = vmatprep.subr.bf16.mxu0 %v4543_v37  ;;  %1825 = vmatprep.subr.bf16.mxu1 %v4546_v38  ;;  %v4622_v37 = vld [vmem:[%s6446_s1 + $0x448] ss:$16 sps:$4 sm:$0xff]   ;;  %v4627_v38 = vld [vmem:[%s6446_s1 + $0x464] ss:$16 sps:$4 sm:$0xff]  }
  0x57   :  { %1662 = vmatpush1.bf16.msra.mxu0 %v4541_v39  ;;  %1826 = vmatpush1.bf16.msra.mxu1 %v4544_v40  ;;  %v4630_v39 = vld [vmem:[%s6446_s1 + $0x46c] ss:$16 sps:$4 sm:$0xff]   ;;  %v4625_v40 = vld [vmem:[%s6446_s1 + $0x460] ss:$16 sps:$4 sm:$0xff]  }
  0x58   :  { %1663 = vmatprep.subr.bf16.mxu0 %v4549_v41  ;;  %1827 = vmatprep.subr.bf16.mxu1 %v4552_v42  ;;  %v4628_v41 = vld [vmem:[%s6446_s1 + $0x468] ss:$16 sps:$4 sm:$0xff]   ;;  %v4633_v42 = vld [vmem:[%s6446_s1 + $0x484] ss:$16 sps:$4 sm:$0xff]  }
  0x5b   :  { %1664 = vmatpush1.bf16.msra.mxu0 %v4547_v43  ;;  %1828 = vmatpush1.bf16.msra.mxu1 %v4550_v44  ;;  %v4636_v43 = vld [vmem:[%s6446_s1 + $0x48c] ss:$16 sps:$4 sm:$0xff]   ;;  %v4631_v44 = vld [vmem:[%s6446_s1 + $0x480] ss:$16 sps:$4 sm:$0xff]  }
  0x5c   :  { %1665 = vmatprep.subr.bf16.mxu0 %v4555_v45  ;;  %1829 = vmatprep.subr.bf16.mxu1 %v4558_v46  ;;  %v4634_v45 = vld [vmem:[%s6446_s1 + $0x488] ss:$16 sps:$4 sm:$0xff]   ;;  %v4639_v46 = vld [vmem:[%s6446_s1 + $0x4a4] ss:$16 sps:$4 sm:$0xff]  }
  0x5f   :  { %1666 = vmatpush1.bf16.msra.mxu0 %v4553_v47  ;;  %1830 = vmatpush1.bf16.msra.mxu1 %v4556_v48  ;;  %v4642_v47 = vld [vmem:[%s6446_s1 + $0x4ac] ss:$16 sps:$4 sm:$0xff]   ;;  %v4637_v48 = vld [vmem:[%s6446_s1 + $0x4a0] ss:$16 sps:$4 sm:$0xff]  }
  0x60   :  { %1667 = vmatprep.subr.bf16.mxu0 %v4561_v49  ;;  %1831 = vmatprep.subr.bf16.mxu1 %v4564_v50  ;;  %v4640_v49 = vld [vmem:[%s6446_s1 + $0x4a8] ss:$16 sps:$4 sm:$0xff]   ;;  %v4645_v50 = vld [vmem:[%s6446_s1 + $0x4c4] ss:$16 sps:$4 sm:$0xff]  }
  0x63   :  { %1668 = vmatpush1.bf16.msra.mxu0 %v4559_v53  ;;  %1832 = vmatpush1.bf16.msra.mxu1 %v4562_v54  ;;  %v4648_v53 = vld [vmem:[%s6446_s1 + $0x4cc] ss:$16 sps:$4 sm:$0xff]   ;;  %v4643_v54 = vld [vmem:[%s6446_s1 + $0x4c0] ss:$16 sps:$4 sm:$0xff]  }
  0x64   :  { %1669 = vmatprep.subr.bf16.mxu0 %v4567_v55  ;;  %1833 = vmatprep.subr.bf16.mxu1 %v4570_v56  ;;  %v4646_v55 = vld [vmem:[%s6446_s1 + $0x4c8] ss:$16 sps:$4 sm:$0xff]   ;;  %v4651_v56 = vld [vmem:[%s6446_s1 + $0x4e4] ss:$16 sps:$4 sm:$0xff]  }
  0x67   :  { %1670 = vmatpush1.bf16.msra.mxu0 %v4565_v57  ;;  %1834 = vmatpush1.bf16.msra.mxu1 %v4568_v58  ;;  %v4654_v57 = vld [vmem:[%s6446_s1 + $0x4ec] ss:$16 sps:$4 sm:$0xff]   ;;  %v4649_v58 = vld [vmem:[%s6446_s1 + $0x4e0] ss:$16 sps:$4 sm:$0xff]  }
  0x68   :  { %1671 = vmatprep.subr.bf16.mxu0 %v4573_v59  ;;  %1835 = vmatprep.subr.bf16.mxu1 %v4576_v60  ;;  %v4652_v59 = vld [vmem:[%s6446_s1 + $0x4e8] ss:$16 sps:$4 sm:$0xff]   ;;  %v4657_v60 = vld [vmem:[%s6446_s1 + $0x504] ss:$16 sps:$4 sm:$0xff]  }
  0x6b   :  { %1672 = vmatpush1.bf16.msra.mxu0 %v4571_v61  ;;  %1836 = vmatpush1.bf16.msra.mxu1 %v4574_v62  ;;  %v4660_v61 = vld [vmem:[%s6446_s1 + $0x50c] ss:$16 sps:$4 sm:$0xff]   ;;  %v4655_v62 = vld [vmem:[%s6446_s1 + $0x500] ss:$16 sps:$4 sm:$0xff]  }
  0x6c   :  { %1673 = vmatprep.subr.bf16.mxu0 %v4579_v63  ;;  %1837 = vmatprep.subr.bf16.mxu1 %v4582_v0  ;;  %v4658_v63 = vld [vmem:[%s6446_s1 + $0x508] ss:$16 sps:$4 sm:$0xff]   ;;  %v4663_v0 = vld [vmem:[%s6446_s1 + $0x524] ss:$16 sps:$4 sm:$0xff]  }
  0x6f   :  { %1674 = vmatpush1.bf16.msra.mxu0 %v4577_v1  ;;  %1838 = vmatpush1.bf16.msra.mxu1 %v4580_v2  ;;  %v4666_v1 = vld [vmem:[%s6446_s1 + $0x52c] ss:$16 sps:$4 sm:$0xff]   ;;  %v4661_v2 = vld [vmem:[%s6446_s1 + $0x520] ss:$16 sps:$4 sm:$0xff]  }
  0x70   :  { %1675 = vmatprep.subr.bf16.mxu0 %v4585_v3  ;;  %1839 = vmatprep.subr.bf16.mxu1 %v4588_v4  ;;  %v4664_v3 = vld [vmem:[%s6446_s1 + $0x528] ss:$16 sps:$4 sm:$0xff]   ;;  %v4669_v4 = vld [vmem:[%s6446_s1 + $0x544] ss:$16 sps:$4 sm:$0xff]  }
  0x73   :  { %1676 = vmatpush1.bf16.msra.mxu0 %v4583_v6  ;;  %1840 = vmatpush1.bf16.msra.mxu1 %v4586_v7  ;;  %v4672_v6 = vld [vmem:[%s6446_s1 + $0x54c] ss:$16 sps:$4 sm:$0xff]   ;;  %v4667_v7 = vld [vmem:[%s6446_s1 + $0x540] ss:$16 sps:$4 sm:$0xff]  }
  0x74   :  { %1677 = vmatprep.subr.bf16.mxu0 %v4591_v8  ;;  %1841 = vmatprep.subr.bf16.mxu1 %v4594_v9  ;;  %v4670_v8 = vld [vmem:[%s6446_s1 + $0x548] ss:$16 sps:$4 sm:$0xff]   ;;  %v4675_v9 = vld [vmem:[%s6446_s1 + $0x564] ss:$16 sps:$4 sm:$0xff]  }
  0x77   :  { %1678 = vmatpush1.bf16.msra.mxu0 %v4589_v12  ;;  %1842 = vmatpush1.bf16.msra.mxu1 %v4592_v13  ;;  %v4673_v12 = vld [vmem:[%s6446_s1 + $0x560] ss:$16 sps:$4 sm:$0xff]   ;;  %v4676_v13 = vld [vmem:[%s6446_s1 + $0x568] ss:$16 sps:$4 sm:$0xff]  }
  0x78   :  { %1679 = vmatprep.subr.bf16.mxu0 %v4597_v14  ;;  %1843 = vmatprep.subr.bf16.mxu1 %v4600_v15  ;;  %v4681_v14 = vld [vmem:[%s6446_s1 + $0x584] ss:$16 sps:$4 sm:$0xff]   ;;  %v4684_v15 = vld [vmem:[%s6446_s1 + $0x58c] ss:$16 sps:$4 sm:$0xff]  }
  0x7b   :  { %1680 = vmatpush1.bf16.msra.mxu0 %v4595_v17  ;;  %1844 = vmatpush1.bf16.msra.mxu1 %v4598_v18  ;;  %v4679_v17 = vld [vmem:[%s6446_s1 + $0x580] ss:$16 sps:$4 sm:$0xff]   ;;  %v4682_v18 = vld [vmem:[%s6446_s1 + $0x588] ss:$16 sps:$4 sm:$0xff]  }
  0x7c   :  { %1681 = vmatprep.subr.bf16.mxu0 %v4603_v19  ;;  %1845 = vmatprep.subr.bf16.mxu1 %v4606_v20  ;;  %v4687_v19 = vld [vmem:[%s6446_s1 + $0x5a4] ss:$16 sps:$4 sm:$0xff]   ;;  %v4690_v20 = vld [vmem:[%s6446_s1 + $0x5ac] ss:$16 sps:$4 sm:$0xff]  }
  0x7f   :  { %1682 = vmatpush1.bf16.msra.mxu0 %v4601_v22  ;;  %1846 = vmatpush1.bf16.msra.mxu1 %v4604_v23  ;;  %v4685_v22 = vld [vmem:[%s6446_s1 + $0x5a0] ss:$16 sps:$4 sm:$0xff]   ;;  %v4688_v23 = vld [vmem:[%s6446_s1 + $0x5a8] ss:$16 sps:$4 sm:$0xff]  }
  0x80   :  { %1692 = vmatprep.subr.bf16.mxu0 %v4609_v24  ;;  %1856 = vmatprep.subr.bf16.mxu1 %v4612_v25  ;;  %v4693_v24 = vld [vmem:[%s6446_s1 + $0x5c4] ss:$16 sps:$4 sm:$0xff]   ;;  %v4696_v25 = vld [vmem:[%s6446_s1 + $0x5cc] ss:$16 sps:$4 sm:$0xff]  }
  0x82   :  { %1684 = vmatmul.mubr.bf16.vlgmr.msra.gmra.mrb[0].mxu0 %v68_v27  ;;  %1848 = vmatmul.mubr.bf16.vlgmr.msra.gmra.mrb[0].mxu1 %v68_v27  ;;  %v4691_v27 = vld [vmem:[%s6446_s1 + $0x5c0] ss:$16 sps:$4 sm:$0xff]  }
  0x83   :  { %1693 = vmatpush1.bf16.msra.mxu0 %v4607_v28  ;;  %1857 = vmatpush1.bf16.msra.mxu1 %v4610_v29  ;;  %v4694_v28 = vld [vmem:[%s6446_s1 + $0x5c8] ss:$16 sps:$4 sm:$0xff]   ;;  %v4699_v29 = vld [vmem:[%s6446_s1 + $0x5e4] ss:$16 sps:$4 sm:$0xff]  }
  0x84   :  { %1694 = vmatprep.subr.bf16.mxu0 %v4615_v30  ;;  %1858 = vmatprep.subr.bf16.mxu1 %v4618_v11  ;;  %v5427_v30 = vrot.slane %v41_v26, %v4963_v52  ;;  %v4697_v11 = vld [vmem:[%s6446_s1 + $0x5e0] ss:$16 sps:$4 sm:$0xff]  }
  0x85   :  { %1724 = vmatprep.mubr.bf16.mxu0 %v71_v31  ;;  %1888 = vmatprep.mubr.bf16.mxu1 %v71_v31  ;;  %v4700_v31 = vld [vmem:[%s6446_s1 + $0x5e8] ss:$16 sps:$4 sm:$0xff]   ;;  %v4775_v26 = vld [vmem:[%s6446_s1 + $0x780] ss:$16 sps:$4 sm:$0xff]  }
  0x87   :  { %1695 = vmatpush1.bf16.msra.mxu0 %v4613_v32  ;;  %1859 = vmatpush1.bf16.msra.mxu1 %v4616_v33  ;;  %v4705_v32 = vld [vmem:[%s6446_s1 + $0x604] ss:$16 sps:$4 sm:$0xff]   ;;  %v4708_v33 = vld [vmem:[%s6446_s1 + $0x60c] ss:$16 sps:$4 sm:$0xff]  }
  0x88   :  { %1696 = vmatprep.subr.bf16.mxu0 %v4621_v34  ;;  %1860 = vmatprep.subr.bf16.mxu1 %v4624_v35  ;;  %v57_v34 = vcombine.high %v5427_v30, %v5427_v30  ;;  %v70_v35 = vpack.c.bf16 %v5226_v21, %v5226_v21  ;;  %v4714_v21 = vld [vmem:[%s6446_s1 + $0x62c] ss:$16 sps:$4 sm:$0xff]  }
  0x8b   :  { %1697 = vmatpush1.bf16.msra.mxu0 %v4619_v36  ;;  %1861 = vmatpush1.bf16.msra.mxu1 %v4622_v37  ;;  %v4703_v36 = vld [vmem:[%s6446_s1 + $0x600] ss:$16 sps:$4 sm:$0xff]   ;;  %v4706_v37 = vld [vmem:[%s6446_s1 + $0x608] ss:$16 sps:$4 sm:$0xff]  }
  0x8c   :  { %1698 = vmatprep.subr.bf16.mxu0 %v4627_v38  ;;  %1862 = vmatprep.subr.bf16.mxu1 %v4630_v39  ;;  %v4711_v38 = vld [vmem:[%s6446_s1 + $0x624] ss:$16 sps:$4 sm:$0xff]   ;;  %v73_v39 = vpack.c.bf16 %v57_v34, %v57_v34  ;;  %v4790_v34 = vld [vmem:[%s6446_s1 + $0x7c8] ss:$16 sps:$4 sm:$0xff]  }
  0x8f   :  { %1699 = vmatpush1.bf16.msra.mxu0 %v4625_v40  ;;  %1863 = vmatpush1.bf16.msra.mxu1 %v4628_v41  ;;  %v4709_v40 = vld [vmem:[%s6446_s1 + $0x620] ss:$16 sps:$4 sm:$0xff]   ;;  %v4712_v41 = vld [vmem:[%s6446_s1 + $0x628] ss:$16 sps:$4 sm:$0xff]  }
  0x90   :  { %1700 = vmatprep.subr.bf16.mxu0 %v4633_v42  ;;  %1864 = vmatprep.subr.bf16.mxu1 %v4636_v43  ;;  %v4717_v42 = vld [vmem:[%s6446_s1 + $0x644] ss:$16 sps:$4 sm:$0xff]   ;;  %v4720_v43 = vld [vmem:[%s6446_s1 + $0x64c] ss:$16 sps:$4 sm:$0xff]  }
  0x93   :  { %1701 = vmatpush1.bf16.msra.mxu0 %v4631_v44  ;;  %1865 = vmatpush1.bf16.msra.mxu1 %v4634_v45  ;;  %v4715_v44 = vld [vmem:[%s6446_s1 + $0x640] ss:$16 sps:$4 sm:$0xff]   ;;  %v4718_v45 = vld [vmem:[%s6446_s1 + $0x648] ss:$16 sps:$4 sm:$0xff]  }
  0x94   :  { %1702 = vmatprep.subr.bf16.mxu0 %v4639_v46  ;;  %1866 = vmatprep.subr.bf16.mxu1 %v4642_v47  ;;  %v4723_v46 = vld [vmem:[%s6446_s1 + $0x664] ss:$16 sps:$4 sm:$0xff]   ;;  %v4726_v47 = vld [vmem:[%s6446_s1 + $0x66c] ss:$16 sps:$4 sm:$0xff]  }
  0x97   :  { %1703 = vmatpush1.bf16.msra.mxu0 %v4637_v48  ;;  %1867 = vmatpush1.bf16.msra.mxu1 %v4640_v49  ;;  %v4721_v48 = vld [vmem:[%s6446_s1 + $0x660] ss:$16 sps:$4 sm:$0xff]   ;;  %v4724_v49 = vld [vmem:[%s6446_s1 + $0x668] ss:$16 sps:$4 sm:$0xff]  }
  0x98   :  { %1704 = vmatprep.subr.bf16.mxu0 %v4645_v50  ;;  %1868 = vmatprep.subr.bf16.mxu1 %v4648_v53  ;;  %v4729_v50 = vld [vmem:[%s6446_s1 + $0x684] ss:$16 sps:$4 sm:$0xff]   ;;  %v4732_v53 = vld [vmem:[%s6446_s1 + $0x68c] ss:$16 sps:$4 sm:$0xff]  }
  0x9b   :  { %1705 = vmatpush1.bf16.msra.mxu0 %v4643_v54  ;;  %1869 = vmatpush1.bf16.msra.mxu1 %v4646_v55  ;;  %v4727_v54 = vld [vmem:[%s6446_s1 + $0x680] ss:$16 sps:$4 sm:$0xff]   ;;  %v4730_v55 = vld [vmem:[%s6446_s1 + $0x688] ss:$16 sps:$4 sm:$0xff]  }
  0x9c   :  { %1706 = vmatprep.subr.bf16.mxu0 %v4651_v56  ;;  %1870 = vmatprep.subr.bf16.mxu1 %v4654_v57  ;;  %v4735_v56 = vld [vmem:[%s6446_s1 + $0x6a4] ss:$16 sps:$4 sm:$0xff]   ;;  %v4738_v57 = vld [vmem:[%s6446_s1 + $0x6ac] ss:$16 sps:$4 sm:$0xff]  }
  0x9f   :  { %1707 = vmatpush1.bf16.msra.mxu0 %v4649_v58  ;;  %1871 = vmatpush1.bf16.msra.mxu1 %v4652_v59  ;;  %v4733_v58 = vld [vmem:[%s6446_s1 + $0x6a0] ss:$16 sps:$4 sm:$0xff]   ;;  %v4736_v59 = vld [vmem:[%s6446_s1 + $0x6a8] ss:$16 sps:$4 sm:$0xff]  }
  0xa0   :  { %1708 = vmatprep.subr.bf16.mxu0 %v4657_v60  ;;  %1872 = vmatprep.subr.bf16.mxu1 %v4660_v61  ;;  %v4741_v60 = vld [vmem:[%s6446_s1 + $0x6c4] ss:$16 sps:$4 sm:$0xff]   ;;  %v4744_v61 = vld [vmem:[%s6446_s1 + $0x6cc] ss:$16 sps:$4 sm:$0xff]  }
  0xa3   :  { %1709 = vmatpush1.bf16.msra.mxu0 %v4655_v62  ;;  %1873 = vmatpush1.bf16.msra.mxu1 %v4658_v63  ;;  %v4739_v62 = vld [vmem:[%s6446_s1 + $0x6c0] ss:$16 sps:$4 sm:$0xff]   ;;  %v4742_v63 = vld [vmem:[%s6446_s1 + $0x6c8] ss:$16 sps:$4 sm:$0xff]  }
  0xa4   :  { %1710 = vmatprep.subr.bf16.mxu0 %v4663_v0  ;;  %1874 = vmatprep.subr.bf16.mxu1 %v4666_v1  ;;  %v4747_v0 = vld [vmem:[%s6446_s1 + $0x6e4] ss:$16 sps:$4 sm:$0xff]   ;;  %v4750_v1 = vld [vmem:[%s6446_s1 + $0x6ec] ss:$16 sps:$4 sm:$0xff]  }
  0xa7   :  { %1711 = vmatpush1.bf16.msra.mxu0 %v4661_v2  ;;  %1875 = vmatpush1.bf16.msra.mxu1 %v4664_v3  ;;  %v4745_v2 = vld [vmem:[%s6446_s1 + $0x6e0] ss:$16 sps:$4 sm:$0xff]   ;;  %v4748_v3 = vld [vmem:[%s6446_s1 + $0x6e8] ss:$16 sps:$4 sm:$0xff]  }
  0xa8   :  { %1712 = vmatprep.subr.bf16.mxu0 %v4669_v4  ;;  %1876 = vmatprep.subr.bf16.mxu1 %v4672_v6  ;;  %v4753_v4 = vld [vmem:[%s6446_s1 + $0x704] ss:$16 sps:$4 sm:$0xff]   ;;  %v4756_v6 = vld [vmem:[%s6446_s1 + $0x70c] ss:$16 sps:$4 sm:$0xff]  }
  0xab   :  { %1713 = vmatpush1.bf16.msra.mxu0 %v4667_v7  ;;  %1877 = vmatpush1.bf16.msra.mxu1 %v4670_v8  ;;  %v4751_v7 = vld [vmem:[%s6446_s1 + $0x700] ss:$16 sps:$4 sm:$0xff]   ;;  %v4754_v8 = vld [vmem:[%s6446_s1 + $0x708] ss:$16 sps:$4 sm:$0xff]  }
  0xac   :  { %1714 = vmatprep.subr.bf16.mxu0 %v4675_v9  ;;  %1878 = vmatprep.subr.bf16.mxu1 %v4678_v10  ;;  %v4759_v9 = vld [vmem:[%s6446_s1 + $0x724] ss:$16 sps:$4 sm:$0xff]   ;;  %v4762_v10 = vld [vmem:[%s6446_s1 + $0x72c] ss:$16 sps:$4 sm:$0xff]  }
  0xaf   :  { %1715 = vmatpush1.bf16.msra.mxu0 %v4673_v12  ;;  %1879 = vmatpush1.bf16.msra.mxu1 %v4676_v13  ;;  %v4757_v12 = vld [vmem:[%s6446_s1 + $0x720] ss:$16 sps:$4 sm:$0xff]   ;;  %v4760_v13 = vld [vmem:[%s6446_s1 + $0x728] ss:$16 sps:$4 sm:$0xff]  }
  0xb0   :  { %1716 = vmatprep.subr.bf16.mxu0 %v4681_v14  ;;  %1880 = vmatprep.subr.bf16.mxu1 %v4684_v15  ;;  %v4765_v14 = vld [vmem:[%s6446_s1 + $0x744] ss:$16 sps:$4 sm:$0xff]   ;;  %v4768_v15 = vld [vmem:[%s6446_s1 + $0x74c] ss:$16 sps:$4 sm:$0xff]  }
  0xb3   :  { %1717 = vmatpush1.bf16.msra.mxu0 %v4679_v17  ;;  %1881 = vmatpush1.bf16.msra.mxu1 %v4682_v18  ;;  %v4763_v17 = vld [vmem:[%s6446_s1 + $0x740] ss:$16 sps:$4 sm:$0xff]   ;;  %v4766_v18 = vld [vmem:[%s6446_s1 + $0x748] ss:$16 sps:$4 sm:$0xff]  }
  0xb4   :  { %1718 = vmatprep.subr.bf16.mxu0 %v4687_v19  ;;  %1882 = vmatprep.subr.bf16.mxu1 %v4690_v20  ;;  %v4771_v19 = vld [vmem:[%s6446_s1 + $0x764] ss:$16 sps:$4 sm:$0xff]   ;;  %v4774_v20 = vld [vmem:[%s6446_s1 + $0x76c] ss:$16 sps:$4 sm:$0xff]  }
  0xb7   :  { %1719 = vmatpush1.bf16.msra.mxu0 %v4685_v22  ;;  %1883 = vmatpush1.bf16.msra.mxu1 %v4688_v23  ;;  %v4769_v22 = vld [vmem:[%s6446_s1 + $0x760] ss:$16 sps:$4 sm:$0xff]   ;;  %v4772_v23 = vld [vmem:[%s6446_s1 + $0x768] ss:$16 sps:$4 sm:$0xff]  }
  0xb8   :  { %1720 = vmatprep.subr.bf16.mxu0 %v4693_v24  ;;  %1884 = vmatprep.subr.bf16.mxu1 %v4696_v25  ;;  %v4777_v24 = vld [vmem:[%s6446_s1 + $0x784] ss:$16 sps:$4 sm:$0xff]   ;;  %v4780_v25 = vld [vmem:[%s6446_s1 + $0x78c] ss:$16 sps:$4 sm:$0xff]  }
  0xbb   :  { %1721 = vmatpush1.bf16.msra.mxu0 %v4691_v27  ;;  %1885 = vmatpush1.bf16.msra.mxu1 %v4694_v28  ;;  %v4778_v27 = vld [vmem:[%s6446_s1 + $0x788] ss:$16 sps:$4 sm:$0xff]   ;;  %v4783_v28 = vld [vmem:[%s6446_s1 + $0x7a4] ss:$16 sps:$4 sm:$0xff]  }
  0xbc   :  { %1722 = vmatprep.subr.bf16.mxu0 %v4699_v29  ;;  %1886 = vmatprep.subr.bf16.mxu1 %v4702_v16  ;;  %v4786_v29 = vld [vmem:[%s6446_s1 + $0x7ac] ss:$16 sps:$4 sm:$0xff]   ;;  %v4781_v16 = vld [vmem:[%s6446_s1 + $0x7a0] ss:$16 sps:$4 sm:$0xff]  }
  0xbf   :  { %1723 = vmatpush1.bf16.msra.mxu0 %v4697_v11  ;;  %1887 = vmatpush1.bf16.msra.mxu1 %v4700_v31  ;;  %v4784_v11 = vld [vmem:[%s6446_s1 + $0x7a8] ss:$16 sps:$4 sm:$0xff]   ;;  %v4789_v31 = vld [vmem:[%s6446_s1 + $0x7c4] ss:$16 sps:$4 sm:$0xff]  }
  0xc0   :  { %1733 = vmatprep.subr.bf16.mxu0 %v4705_v32  ;;  %1897 = vmatprep.subr.bf16.mxu1 %v4708_v33  ;;  %v4792_v32 = vld [vmem:[%s6446_s1 + $0x7cc] ss:$16 sps:$4 sm:$0xff]   ;;  %v4787_v33 = vld [vmem:[%s6446_s1 + $0x7c0] ss:$16 sps:$4 sm:$0xff]  }
  0xc2   :  { %1725 = vmatmul.mubr.bf16.vlgmr.msra.gmra.mrb[0].mxu0 %v70_v35  ;;  %1889 = vmatmul.mubr.bf16.vlgmr.msra.gmra.mrb[0].mxu1 %v70_v35  ;;  %v4795_v35 = vld [vmem:[%s6446_s1 + $0x7e4] ss:$16 sps:$4 sm:$0xff]  }
  0xc3   :  { %1734 = vmatpush1.bf16.msra.mxu0 %v4703_v36  ;;  %1898 = vmatpush1.bf16.msra.mxu1 %v4706_v37  ;;  %v4798_v36 = vld [vmem:[%s6446_s1 + $0x7ec] ss:$16 sps:$4 sm:$0xff]   ;;  %v1946_v37 = vld [vmem:[%s6448_s2] sm:$0xff] }
  0xc4   :  { %1735 = vmatprep.subr.bf16.mxu0 %v4711_v38  ;;  %1899 = vmatprep.subr.bf16.mxu1 %v4714_v21  ;;  %v1950_v38 = vld [vmem:[%s6448_s2 + $0x20] sm:$0xff]  ;;  %v1947_v21 = vld [vmem:[%s6448_s2 + $0x8] sm:$0xff] }
  0xc5   :  { %1765 = vmatprep.mubr.bf16.mxu0 %v73_v39  ;;  %1929 = vmatprep.mubr.bf16.mxu1 %v73_v39  ;;  %v1951_v39 = vld [vmem:[%s6448_s2 + $0x28] sm:$0xff] }
  0xc7   :  { %1736 = vmatpush1.bf16.msra.mxu0 %v4709_v40  ;;  %1900 = vmatpush1.bf16.msra.mxu1 %v4712_v41  ;;  %v4793_v40 = vld [vmem:[%s6446_s1 + $0x7e0] ss:$16 sps:$4 sm:$0xff]   ;;  %v4796_v41 = vld [vmem:[%s6446_s1 + $0x7e8] ss:$16 sps:$4 sm:$0xff]  }
  0xc8   :  { %1737 = vmatprep.subr.bf16.mxu0 %v4717_v42  ;;  %1901 = vmatprep.subr.bf16.mxu1 %v4720_v43  ;;  %v4119_v42 = vcombine.high %v1946_v37, %v1950_v38  ;;  %v4121_v43 = vcombine.high %v1947_v21, %v1951_v39 }
  0xcb   :  { %1738 = vmatpush1.bf16.msra.mxu0 %v4715_v44  ;;  %1902 = vmatpush1.bf16.msra.mxu1 %v4718_v45  ;;  %v1954_v44 = vld [vmem:[%s6448_s2 + $0x40] sm:$0xff] }
  0xcc   :  { %1739 = vmatprep.subr.bf16.mxu0 %v4723_v46  ;;  %1903 = vmatprep.subr.bf16.mxu1 %v4726_v47  ;;  %v1958_v45 = vld [vmem:[%s6448_s2 + $0x60] sm:$0xff]  ;;  %v1955_v46 = vld [vmem:[%s6448_s2 + $0x48] sm:$0xff] }
  0xcd   :  { %v1959_v47 = vld [vmem:[%s6448_s2 + $0x68] sm:$0xff] }
  0xcf   :  { %1740 = vmatpush1.bf16.msra.mxu0 %v4721_v48  ;;  %1904 = vmatpush1.bf16.msra.mxu1 %v4724_v49  ;;  %v72_v48 = vpack.c.bf16 %v5427_v30, %v5427_v30  ;;  %v4118_v49 = vcombine.low %v1946_v37, %v1950_v38  ;;  %v1963_v30 = vld [vmem:[%s6448_s2 + $0x88] sm:$0xff] }
  0xd0   :  { %1741 = vmatprep.subr.bf16.mxu0 %v4729_v50  ;;  %1905 = vmatprep.subr.bf16.mxu1 %v4732_v53  ;;  %v4120_v50 = vcombine.low %v1947_v21, %v1951_v39  ;;  %v4127_v53 = vcombine.high %v1954_v44, %v1958_v45 }
  0xd3   :  { %1742 = vmatpush1.bf16.msra.mxu0 %v4727_v54  ;;  %1906 = vmatpush1.bf16.msra.mxu1 %v4730_v55  ;;  %v4129_v54 = vcombine.high %v1955_v46, %v1959_v47  ;;  %v1962_v55 = vld [vmem:[%s6448_s2 + $0x80] sm:$0xff] }
  0xd4   :  { %1743 = vmatprep.subr.bf16.mxu0 %v4735_v56  ;;  %1907 = vmatprep.subr.bf16.mxu1 %v4738_v57  ;;  %v1966_v56 = vld [vmem:[%s6448_s2 + $0xa0] sm:$0xff]  ;;  %v1967_v57 = vld [vmem:[%s6448_s2 + $0xa8] sm:$0xff] }
  0xd7   :  { %1744 = vmatpush1.bf16.msra.mxu0 %v4733_v58  ;;  %1908 = vmatpush1.bf16.msra.mxu1 %v4736_v59  ;;  %v4126_v58 = vcombine.low %v1954_v44, %v1958_v45  ;;  %v4128_v59 = vcombine.low %v1955_v46, %v1959_v47 }
  0xd8   :  { %1745 = vmatprep.subr.bf16.mxu0 %v4741_v60  ;;  %1909 = vmatprep.subr.bf16.mxu1 %v4744_v61  ;;  %v4135_v60 = vcombine.high %v1962_v55, %v1966_v56  ;;  %v4137_v61 = vcombine.high %v1963_v30, %v1967_v57 }
  0xdb   :  { %1746 = vmatpush1.bf16.msra.mxu0 %v4739_v62  ;;  %1910 = vmatpush1.bf16.msra.mxu1 %v4742_v63  ;;  %v1970_v62 = vld [vmem:[%s6448_s2 + $0xc0] sm:$0xff] }
  0xdc   :  { %1747 = vmatprep.subr.bf16.mxu0 %v4747_v0  ;;  %1911 = vmatprep.subr.bf16.mxu1 %v4750_v1  ;;  %v1974_v63 = vld [vmem:[%s6448_s2 + $0xe0] sm:$0xff]  ;;  %v1971_v0 = vld [vmem:[%s6448_s2 + $0xc8] sm:$0xff] }
  0xdd   :  { %v1975_v1 = vld [vmem:[%s6448_s2 + $0xe8] sm:$0xff] }
  0xdf   :  { %1748 = vmatpush1.bf16.msra.mxu0 %v4745_v2  ;;  %1912 = vmatpush1.bf16.msra.mxu1 %v4748_v3  ;;  %v4134_v2 = vcombine.low %v1962_v55, %v1966_v56  ;;  %v4136_v3 = vcombine.low %v1963_v30, %v1967_v57  ;;  %v2026_v57 = vld [vmem:[%s6448_s2 + $0x280] sm:$0xff] }
  0xe0   :  { %1749 = vmatprep.subr.bf16.mxu0 %v4753_v4  ;;  %1913 = vmatprep.subr.bf16.mxu1 %v4756_v6  ;;  %v4143_v4 = vcombine.high %v1970_v62, %v1974_v63  ;;  %v4145_v6 = vcombine.high %v1971_v0, %v1975_v1 }
  0xe3   :  { %1750 = vmatpush1.bf16.msra.mxu0 %v4751_v7  ;;  %1914 = vmatpush1.bf16.msra.mxu1 %v4754_v8  ;;  %v1978_v7 = vld [vmem:[%s6448_s2 + $0x100] sm:$0xff] }
  0xe4   :  { %1751 = vmatprep.subr.bf16.mxu0 %v4759_v9  ;;  %1915 = vmatprep.subr.bf16.mxu1 %v4762_v10  ;;  %v1982_v8 = vld [vmem:[%s6448_s2 + $0x120] sm:$0xff]  ;;  %v1979_v9 = vld [vmem:[%s6448_s2 + $0x108] sm:$0xff] }
  0xe5   :  { %v1983_v10 = vld [vmem:[%s6448_s2 + $0x128] sm:$0xff] }
  0xe7   :  { %1752 = vmatpush1.bf16.msra.mxu0 %v4757_v12  ;;  %1916 = vmatpush1.bf16.msra.mxu1 %v4760_v13  ;;  %v4142_v12 = vcombine.low %v1970_v62, %v1974_v63  ;;  %v4144_v13 = vcombine.low %v1971_v0, %v1975_v1  ;;  %v2034_v1 = vld [vmem:[%s6448_s2 + $0x2c0] sm:$0xff] }
  0xe8   :  { %1753 = vmatprep.subr.bf16.mxu0 %v4765_v14  ;;  %1917 = vmatprep.subr.bf16.mxu1 %v4768_v15  ;;  %v4151_v14 = vcombine.high %v1978_v7, %v1982_v8  ;;  %v4153_v15 = vcombine.high %v1979_v9, %v1983_v10 }
  0xeb   :  { %1754 = vmatpush1.bf16.msra.mxu0 %v4763_v17  ;;  %1918 = vmatpush1.bf16.msra.mxu1 %v4766_v18  ;;  %v1986_v17 = vld [vmem:[%s6448_s2 + $0x140] sm:$0xff] }
  0xec   :  { %1755 = vmatprep.subr.bf16.mxu0 %v4771_v19  ;;  %1919 = vmatprep.subr.bf16.mxu1 %v4774_v20  ;;  %v1990_v18 = vld [vmem:[%s6448_s2 + $0x160] sm:$0xff]  ;;  %v1987_v19 = vld [vmem:[%s6448_s2 + $0x148] sm:$0xff] }
  0xed   :  { %v1991_v20 = vld [vmem:[%s6448_s2 + $0x168] sm:$0xff] }
  0xef   :  { %1756 = vmatpush1.bf16.msra.mxu0 %v4769_v22  ;;  %1920 = vmatpush1.bf16.msra.mxu1 %v4772_v23  ;;  %v4150_v22 = vcombine.low %v1978_v7, %v1982_v8  ;;  %v4152_v23 = vcombine.low %v1979_v9, %v1983_v10  ;;  %v2042_v10 = vld [vmem:[%s6448_s2 + $0x300] sm:$0xff] }
  0xf0   :  { %1757 = vmatprep.subr.bf16.mxu0 %v4777_v24  ;;  %1921 = vmatprep.subr.bf16.mxu1 %v4780_v25  ;;  %v4159_v24 = vcombine.high %v1986_v17, %v1990_v18  ;;  %v4161_v25 = vcombine.high %v1987_v19, %v1991_v20 }
  0xf3   :  { %1758 = vmatpush1.bf16.msra.mxu0 %v4775_v26  ;;  %1922 = vmatpush1.bf16.msra.mxu1 %v4778_v27  ;;  %v1994_v26 = vld [vmem:[%s6448_s2 + $0x180] sm:$0xff] }
  0xf4   :  { %1759 = vmatprep.subr.bf16.mxu0 %v4783_v28  ;;  %1923 = vmatprep.subr.bf16.mxu1 %v4786_v29  ;;  %v1998_v27 = vld [vmem:[%s6448_s2 + $0x1a0] sm:$0xff]  ;;  %v1995_v28 = vld [vmem:[%s6448_s2 + $0x188] sm:$0xff] }
  0xf5   :  { %v1999_v29 = vld [vmem:[%s6448_s2 + $0x1a8] sm:$0xff]  ;;  %v4166_v37 = vcombine.low %v1994_v26, %v1998_v27 }
  0xf6   :  { %v4168_v38 = vcombine.low %v1995_v28, %v1999_v29 }
  0xf7   :  { %1760 = vmatpush1.bf16.msra.mxu0 %v4781_v16  ;;  %1924 = vmatpush1.bf16.msra.mxu1 %v4784_v11  ;;  %v4158_v16 = vcombine.low %v1986_v17, %v1990_v18  ;;  %v4160_v11 = vcombine.low %v1987_v19, %v1991_v20  ;;  %v2050_v20 = vld [vmem:[%s6448_s2 + $0x340] sm:$0xff] }
  0xf8   :  { %1761 = vmatprep.subr.bf16.mxu0 %v4789_v31  ;;  %1925 = vmatprep.subr.bf16.mxu1 %v4792_v32  ;;  %v4167_v31 = vcombine.high %v1994_v26, %v1998_v27  ;;  %v4169_v32 = vcombine.high %v1995_v28, %v1999_v29  ;;  %v2058_v29 = vld [vmem:[%s6448_s2 + $0x380] sm:$0xff] }
  0xfb   :  { %1762 = vmatpush1.bf16.msra.mxu0 %v4787_v33  ;;  %1926 = vmatpush1.bf16.msra.mxu1 %v4790_v34  ;;  %v2002_v33 = vld [vmem:[%s6448_s2 + $0x1c0] sm:$0xff] }
  0xfc   :  { %1763 = vmatprep.subr.bf16.mxu0 %v4795_v35  ;;  %1927 = vmatprep.subr.bf16.mxu1 %v4798_v36  ;;  %v2006_v34 = vld [vmem:[%s6448_s2 + $0x1e0] sm:$0xff]  ;;  %v2003_v35 = vld [vmem:[%s6448_s2 + $0x1c8] sm:$0xff] }
  0xfd   :  { %v2007_v36 = vld [vmem:[%s6448_s2 + $0x1e8] sm:$0xff]  ;;  %v4175_v21 = vcombine.high %v2002_v33, %v2006_v34  ;;  %v4174_v44 = vcombine.low %v2002_v33, %v2006_v34 }
  0xfe   :  { %v4177_v39 = vcombine.high %v2003_v35, %v2007_v36  ;;  %v4176_v45 = vcombine.low %v2003_v35, %v2007_v36 }
  0xff   :  { %1764 = vmatpush1.bf16.msra.mxu0 %v4793_v40  ;;  %1928 = vmatpush1.bf16.msra.mxu1 %v4796_v41  ;;  %v2010_v40 = vld [vmem:[%s6448_s2 + $0x200] sm:$0xff] }
 0x100   :  { %3482 = vmatprep.subr.bf16.mxu0 %v4119_v42  ;;  %3564 = vmatprep.subr.bf16.mxu1 %v4121_v43  ;;  %v2014_v41 = vld [vmem:[%s6448_s2 + $0x220] sm:$0xff]  ;;  %v2011_v42 = vld [vmem:[%s6448_s2 + $0x208] sm:$0xff] }
 0x101   :  { %v2015_v43 = vld [vmem:[%s6448_s2 + $0x228] sm:$0xff]  ;;  %v4183_v46 = vcombine.high %v2010_v40, %v2014_v41 }
 0x102   :  { %1766 = vmatmul.mubr.bf16.vlgmr.msra.gmra.mrb[0].mxu0 %v72_v48  ;;  %1930 = vmatmul.mubr.bf16.vlgmr.msra.gmra.mrb[0].mxu1 %v72_v48  ;;  %v4185_v47 = vcombine.high %v2011_v42, %v2015_v43  ;;  %v2018_v48 = vld [vmem:[%s6448_s2 + $0x240] sm:$0xff]  ;;  %v4184_v55 = vcombine.low %v2011_v42, %v2015_v43 }
 0x103   :  { %3483 = vmatpush1.bf16.msra.mxu0 %v4118_v49  ;;  %3565 = vmatpush1.bf16.msra.mxu1 %v4120_v50  ;;  %v2022_v49 = vld [vmem:[%s6448_s2 + $0x260] sm:$0xff]  ;;  %v2019_v50 = vld [vmem:[%s6448_s2 + $0x248] sm:$0xff] }
 0x104   :  { %3484 = vmatprep.subr.bf16.mxu0 %v4127_v53  ;;  %3566 = vmatprep.subr.bf16.mxu1 %v4129_v54  ;;  %v2023_v53 = vld [vmem:[%s6448_s2 + $0x268] sm:$0xff]  ;;  %v4182_v54 = vcombine.low %v2010_v40, %v2014_v41  ;;  %v4191_v56 = vcombine.high %v2018_v48, %v2022_v49 }
 0x105   :  { %v4193_v30 = vcombine.high %v2019_v50, %v2023_v53  ;;  %v4192_v62 = vcombine.low %v2019_v50, %v2023_v53  ;;  %v2071_v41 = vld [vmem:[%s6448_s2 + $0x3e8] sm:$0xff] }
 0x107   :  { %3485 = vmatpush1.bf16.msra.mxu0 %v4126_v58  ;;  %3567 = vmatpush1.bf16.msra.mxu1 %v4128_v59  ;;  %v2030_v58 = vld [vmem:[%s6448_s2 + $0x2a0] sm:$0xff]  ;;  %v2027_v59 = vld [vmem:[%s6448_s2 + $0x288] sm:$0xff] }
 0x108   :  { %3486 = vmatprep.subr.bf16.mxu0 %v4135_v60  ;;  %3568 = vmatprep.subr.bf16.mxu1 %v4137_v61  ;;  %v2031_v60 = vld [vmem:[%s6448_s2 + $0x2a8] sm:$0xff]  ;;  %v4190_v61 = vcombine.low %v2018_v48, %v2022_v49  ;;  %v4199_v63 = vcombine.high %v2026_v57, %v2030_v58 }
 0x109   :  { %v4201_v0 = vcombine.high %v2027_v59, %v2031_v60  ;;  %v4200_v7 = vcombine.low %v2027_v59, %v2031_v60  ;;  %v2079_v49 = vld [vmem:[%s6448_s2 + $0x428] sm:$0xff] }
 0x10b   :  { %3487 = vmatpush1.bf16.msra.mxu0 %v4134_v2  ;;  %3569 = vmatpush1.bf16.msra.mxu1 %v4136_v3  ;;  %v2038_v2 = vld [vmem:[%s6448_s2 + $0x2e0] sm:$0xff]  ;;  %v2035_v3 = vld [vmem:[%s6448_s2 + $0x2c8] sm:$0xff] }
 0x10c   :  { %3488 = vmatprep.subr.bf16.mxu0 %v4143_v4  ;;  %3570 = vmatprep.subr.bf16.mxu1 %v4145_v6  ;;  %v2039_v4 = vld [vmem:[%s6448_s2 + $0x2e8] sm:$0xff]  ;;  %v4198_v6 = vcombine.low %v2026_v57, %v2030_v58  ;;  %v4207_v8 = vcombine.high %v2034_v1, %v2038_v2 }
 0x10d   :  { %v4209_v9 = vcombine.high %v2035_v3, %v2039_v4  ;;  %v4208_v17 = vcombine.low %v2035_v3, %v2039_v4  ;;  %v2083_v3 = vld [vmem:[%s6448_s2 + $0x448] sm:$0xff] }
 0x10e   :  { %v2087_v4 = vld [vmem:[%s6448_s2 + $0x468] sm:$0xff] }
 0x10f   :  { %3489 = vmatpush1.bf16.msra.mxu0 %v4142_v12  ;;  %3571 = vmatpush1.bf16.msra.mxu1 %v4144_v13  ;;  %v2046_v12 = vld [vmem:[%s6448_s2 + $0x320] sm:$0xff]  ;;  %v2043_v13 = vld [vmem:[%s6448_s2 + $0x308] sm:$0xff] }
 0x110   :  { %3490 = vmatprep.subr.bf16.mxu0 %v4151_v14  ;;  %3572 = vmatprep.subr.bf16.mxu1 %v4153_v15  ;;  %v2047_v14 = vld [vmem:[%s6448_s2 + $0x328] sm:$0xff]  ;;  %v4206_v15 = vcombine.low %v2034_v1, %v2038_v2  ;;  %v4215_v18 = vcombine.high %v2042_v10, %v2046_v12  ;;  %v2086_v2 = vld [vmem:[%s6448_s2 + $0x460] sm:$0xff] }
 0x111   :  { %v4217_v19 = vcombine.high %v2043_v13, %v2047_v14  ;;  %v4216_v26 = vcombine.low %v2043_v13, %v2047_v14  ;;  %v2091_v13 = vld [vmem:[%s6448_s2 + $0x488] sm:$0xff] }
 0x112   :  { %v2095_v14 = vld [vmem:[%s6448_s2 + $0x4a8] sm:$0xff] }
 0x113   :  { %3491 = vmatpush1.bf16.msra.mxu0 %v4150_v22  ;;  %3573 = vmatpush1.bf16.msra.mxu1 %v4152_v23  ;;  %v2054_v22 = vld [vmem:[%s6448_s2 + $0x360] sm:$0xff]  ;;  %v2051_v23 = vld [vmem:[%s6448_s2 + $0x348] sm:$0xff] }
 0x114   :  { %3492 = vmatprep.subr.bf16.mxu0 %v4159_v24  ;;  %3574 = vmatprep.subr.bf16.mxu1 %v4161_v25  ;;  %v2055_v24 = vld [vmem:[%s6448_s2 + $0x368] sm:$0xff]  ;;  %v4214_v25 = vcombine.low %v2042_v10, %v2046_v12  ;;  %v4223_v27 = vcombine.high %v2050_v20, %v2054_v22  ;;  %v4257_v10 = vcombine.high %v2083_v3, %v2087_v4  ;;  %v2094_v12 = vld [vmem:[%s6448_s2 + $0x4a0] sm:$0xff] }
 0x115   :  { %v4225_v28 = vcombine.high %v2051_v23, %v2055_v24  ;;  %v4224_v33 = vcombine.low %v2051_v23, %v2055_v24  ;;  %v2102_v23 = vld [vmem:[%s6448_s2 + $0x4e0] sm:$0xff]  ;;  %v2099_v24 = vld [vmem:[%s6448_s2 + $0x4c8] sm:$0xff] }
 0x117   :  { %3493 = vmatpush1.bf16.msra.mxu0 %v4158_v16  ;;  %3575 = vmatpush1.bf16.msra.mxu1 %v4160_v11  ;;  %v2062_v16 = vld [vmem:[%s6448_s2 + $0x3a0] sm:$0xff]  ;;  %v2059_v11 = vld [vmem:[%s6448_s2 + $0x388] sm:$0xff] }
 0x118   :  { %3494 = vmatprep.subr.bf16.mxu0 %v4167_v31  ;;  %3576 = vmatprep.subr.bf16.mxu1 %v4169_v32  ;;  %v2063_v31 = vld [vmem:[%s6448_s2 + $0x3a8] sm:$0xff]  ;;  %v4222_v32 = vcombine.low %v2050_v20, %v2054_v22  ;;  %v4231_v34 = vcombine.high %v2058_v29, %v2062_v16  ;;  %v4230_v36 = vcombine.low %v2058_v29, %v2062_v16  ;;  %v2098_v22 = vld [vmem:[%s6448_s2 + $0x4c0] sm:$0xff] }
 0x119   :  { %v4233_v35 = vcombine.high %v2059_v11, %v2063_v31  ;;  %v4265_v20 = vcombine.high %v2091_v13, %v2095_v14  ;;  %v2106_v16 = vld [vmem:[%s6448_s2 + $0x500] sm:$0xff] }
 0x11b   :  { %3495 = vmatpush1.bf16.msra.mxu0 %v4166_v37  ;;  %3577 = vmatpush1.bf16.msra.mxu1 %v4168_v38  ;;  %v4232_v37 = vcombine.low %v2059_v11, %v2063_v31  ;;  %v2066_v38 = vld [vmem:[%s6448_s2 + $0x3c0] sm:$0xff]  ;;  %v2107_v31 = vld [vmem:[%s6448_s2 + $0x508] sm:$0xff] }
 0x11c   :  { %3496 = vmatprep.subr.bf16.mxu0 %v4175_v21  ;;  %3578 = vmatprep.subr.bf16.mxu1 %v4177_v39  ;;  %v2070_v21 = vld [vmem:[%s6448_s2 + $0x3e0] sm:$0xff]  ;;  %v2067_v39 = vld [vmem:[%s6448_s2 + $0x3c8] sm:$0xff] }
 0x11d   :  { %v4239_v40 = vcombine.high %v2066_v38, %v2070_v21  ;;  %v4238_v42 = vcombine.low %v2066_v38, %v2070_v21  ;;  %v4240_v43 = vcombine.low %v2067_v39, %v2071_v41  ;;  %v2110_v11 = vld [vmem:[%s6448_s2 + $0x520] sm:$0xff]  ;;  %v2115_v21 = vld [vmem:[%s6448_s2 + $0x548] sm:$0xff] }
 0x11e   :  { %v2118_v38 = vld [vmem:[%s6448_s2 + $0x560] sm:$0xff] }
 0x11f   :  { %3497 = vmatpush1.bf16.msra.mxu0 %v4174_v44  ;;  %3579 = vmatpush1.bf16.msra.mxu1 %v4176_v45  ;;  %v4241_v44 = vcombine.high %v2067_v39, %v2071_v41  ;;  %v2074_v45 = vld [vmem:[%s6448_s2 + $0x400] sm:$0xff]  ;;  %v2119_v39 = vld [vmem:[%s6448_s2 + $0x568] sm:$0xff] }
 0x120   :  { %3498 = vmatprep.subr.bf16.mxu0 %v4183_v46  ;;  %3580 = vmatprep.subr.bf16.mxu1 %v4185_v47  ;;  %v2078_v46 = vld [vmem:[%s6448_s2 + $0x420] sm:$0xff]  ;;  %v2075_v47 = vld [vmem:[%s6448_s2 + $0x408] sm:$0xff] }
 0x121   :  { %v4247_v48 = vcombine.high %v2074_v45, %v2078_v46  ;;  %v4246_v50 = vcombine.low %v2074_v45, %v2078_v46  ;;  %v4248_v53 = vcombine.low %v2075_v47, %v2079_v49  ;;  %v2126_v45 = vld [vmem:[%s6448_s2 + $0x5a0] sm:$0xff]  ;;  %v2123_v46 = vld [vmem:[%s6448_s2 + $0x588] sm:$0xff] }
 0x123   :  { %3499 = vmatpush1.bf16.msra.mxu0 %v4182_v54  ;;  %3581 = vmatpush1.bf16.msra.mxu1 %v4184_v55  ;;  %v4249_v54 = vcombine.high %v2075_v47, %v2079_v49  ;;  %v2127_v47 = vld [vmem:[%s6448_s2 + $0x5a8] sm:$0xff]  ;;  %v4288_v49 = vcombine.low %v2115_v21, %v2119_v39 }
 0x124   :  { %3500 = vmatprep.subr.bf16.mxu0 %v4191_v56  ;;  %3582 = vmatprep.subr.bf16.mxu1 %v4193_v30 }
 0x127   :  { %3501 = vmatpush1.bf16.msra.mxu0 %v4190_v61  ;;  %3583 = vmatpush1.bf16.msra.mxu1 %v4192_v62  ;;  %v2082_v62 = vld [vmem:[%s6448_s2 + $0x440] sm:$0xff] }
 0x128   :  { %3502 = vmatprep.subr.bf16.mxu0 %v4199_v63  ;;  %3584 = vmatprep.subr.bf16.mxu1 %v4201_v0 }
 0x12b   :  { %3503 = vmatpush1.bf16.msra.mxu0 %v4198_v6  ;;  %3585 = vmatpush1.bf16.msra.mxu1 %v4200_v7 }
 0x12c   :  { %3504 = vmatprep.subr.bf16.mxu0 %v4207_v8  ;;  %3586 = vmatprep.subr.bf16.mxu1 %v4209_v9  ;;  %v2090_v8 = vld [vmem:[%s6448_s2 + $0x480] sm:$0xff]  ;;  %v4255_v9 = vcombine.high %v2082_v62, %v2086_v2 }
 0x12f   :  { %3505 = vmatpush1.bf16.msra.mxu0 %v4206_v15  ;;  %3587 = vmatpush1.bf16.msra.mxu1 %v4208_v17  ;;  %v4254_v17 = vcombine.low %v2082_v62, %v2086_v2  ;;  %v2138_v62 = vld [vmem:[%s6448_s2 + $0x600] sm:$0xff] }
 0x130   :  { %3506 = vmatprep.subr.bf16.mxu0 %v4215_v18  ;;  %3588 = vmatprep.subr.bf16.mxu1 %v4217_v19  ;;  %v4256_v18 = vcombine.low %v2083_v3, %v2087_v4  ;;  %v4263_v19 = vcombine.high %v2090_v8, %v2094_v12 }
 0x133   :  { %3507 = vmatpush1.bf16.msra.mxu0 %v4214_v25  ;;  %3589 = vmatpush1.bf16.msra.mxu1 %v4216_v26  ;;  %v2103_v25 = vld [vmem:[%s6448_s2 + $0x4e8] sm:$0xff]  ;;  %v4262_v26 = vcombine.low %v2090_v8, %v2094_v12 }
 0x134   :  { %3508 = vmatprep.subr.bf16.mxu0 %v4223_v27  ;;  %3590 = vmatprep.subr.bf16.mxu1 %v4225_v28  ;;  %v4264_v27 = vcombine.low %v2091_v13, %v2095_v14  ;;  %v4271_v28 = vcombine.high %v2098_v22, %v2102_v23  ;;  %v4273_v29 = vcombine.high %v2099_v24, %v2103_v25  ;;  %v2147_v12 = vld [vmem:[%s6448_s2 + $0x648] sm:$0xff] }
 0x135   :  { %v2151_v13 = vld [vmem:[%s6448_s2 + $0x668] sm:$0xff] }
 0x137   :  { %3509 = vmatpush1.bf16.msra.mxu0 %v4222_v32  ;;  %3591 = vmatpush1.bf16.msra.mxu1 %v4224_v33  ;;  %v2111_v32 = vld [vmem:[%s6448_s2 + $0x528] sm:$0xff]  ;;  %v4270_v33 = vcombine.low %v2098_v22, %v2102_v23  ;;  %v2158_v22 = vld [vmem:[%s6448_s2 + $0x6a0] sm:$0xff] }
 0x138   :  { %3510 = vmatprep.subr.bf16.mxu0 %v4231_v34  ;;  %3592 = vmatprep.subr.bf16.mxu1 %v4233_v35  ;;  %v4272_v34 = vcombine.low %v2099_v24, %v2103_v25  ;;  %v4279_v35 = vcombine.high %v2106_v16, %v2110_v11  ;;  %v4280_v41 = vcombine.low %v2107_v31, %v2111_v32  ;;  %v2155_v23 = vld [vmem:[%s6448_s2 + $0x688] sm:$0xff] }
 0x139   :  { %v2159_v24 = vld [vmem:[%s6448_s2 + $0x6a8] sm:$0xff] }
 0x13b   :  { %3511 = vmatpush1.bf16.msra.mxu0 %v4230_v36  ;;  %3593 = vmatpush1.bf16.msra.mxu1 %v4232_v37  ;;  %v4281_v36 = vcombine.high %v2107_v31, %v2111_v32  ;;  %v2114_v37 = vld [vmem:[%s6448_s2 + $0x540] sm:$0xff]  ;;  %v2167_v31 = vld [vmem:[%s6448_s2 + $0x6e8] sm:$0xff] }
 0x13c   :  { %3512 = vmatprep.subr.bf16.mxu0 %v4239_v40  ;;  %3594 = vmatprep.subr.bf16.mxu1 %v4241_v44  ;;  %v4278_v40 = vcombine.low %v2106_v16, %v2110_v11  ;;  %v2122_v44 = vld [vmem:[%s6448_s2 + $0x580] sm:$0xff]  ;;  %v2163_v11 = vld [vmem:[%s6448_s2 + $0x6c8] sm:$0xff] }
 0x13d   :  { %v2166_v16 = vld [vmem:[%s6448_s2 + $0x6e0] sm:$0xff] }
 0x13f   :  { %3513 = vmatpush1.bf16.msra.mxu0 %v4238_v42  ;;  %3595 = vmatpush1.bf16.msra.mxu1 %v4240_v43  ;;  %v4287_v42 = vcombine.high %v2114_v37, %v2118_v38  ;;  %v4289_v43 = vcombine.high %v2115_v21, %v2119_v39  ;;  %v2175_v21 = vld [vmem:[%s6448_s2 + $0x728] sm:$0xff] }
 0x140   :  { %3523 = vmatprep.subr.bf16.mxu0 %v4247_v48  ;;  %3605 = vmatprep.subr.bf16.mxu1 %v4249_v54  ;;  %v4286_v48 = vcombine.low %v2114_v37, %v2118_v38  ;;  %v2130_v54 = vld [vmem:[%s6448_s2 + $0x5c0] sm:$0xff]  ;;  %v2171_v38 = vld [vmem:[%s6448_s2 + $0x708] sm:$0xff] }
 0x141   :  { %v2174_v37 = vld [vmem:[%s6448_s2 + $0x720] sm:$0xff] }
 0x1d5   :  { %v1767_v55 = vpop.f32.mrb[0].mxu0  ;;  %v5837_v56 = vpop.f32.mrb[0].mxu1 }
 0x1d6   :  { %v1938_v30 = vmax.f32 %v1767_v55, 0.0  ;;  %v1769_v57 = vpop.f32.mrb[1].mxu0  ;;  %v1933_v58 = vpop.f32.mrb[1].mxu1  ;;  %v2134_v55 = vld [vmem:[%s6448_s2 + $0x5e0] sm:$0xff] }
 0x1d7   :  { %v1939_v59 = vmax.f32 %v1769_v57, 0.0  ;;  %v1771_v60 = vpop.f32.mrb[2].mxu0  ;;  %v1935_v61 = vpop.f32.mrb[2].mxu1  ;;  %v1941_v63 = vmax.f32 %v1933_v58, 0.0  ;;  %v2135_v57 = vld [vmem:[%s6448_s2 + $0x5e8] sm:$0xff]  ;;  %v4294_v58 = vcombine.low %v2122_v44, %v2126_v45  ;;  %v4302_v2 = vcombine.low %v2130_v54, %v2134_v55 }
 0x1d8   :  { %v1772_v0 = vpop.f32.mrb[3].mxu0  ;;  %v1936_v1 = vpop.f32.mrb[3].mxu1  ;;  %v5853_v7 = vpack.c.bf16 %v1938_v30, %v1938_v30  ;;  %v2131_v30 = vld [vmem:[%s6448_s2 + $0x5c8] sm:$0xff]  ;;  %v4303_v60 = vcombine.high %v2130_v54, %v2134_v55  ;;  %v2190_v54 = vld [vmem:[%s6448_s2 + $0x7a0] sm:$0xff] }
 0x1d9   :  { %v5851_v6 = vpack.c.bf16 %v1939_v59, %v1939_v59  ;;  %v5869_v15 = vpack.c.bf16 %v1941_v63, %v1941_v63  ;;  %v4296_v59 = vcombine.low %v2123_v46, %v2127_v47  ;;  %v4305_v61 = vcombine.high %v2131_v30, %v2135_v57  ;;  %v2142_v63 = vld [vmem:[%s6448_s2 + $0x620] sm:$0xff]  ;;  %v2139_v0 = vld [vmem:[%s6448_s2 + $0x608] sm:$0xff] }
 0x1da   :  { %v2143_v1 = vld [vmem:[%s6448_s2 + $0x628] sm:$0xff]  ;;  %v4304_v3 = vcombine.low %v2131_v30, %v2135_v57  ;;  %v4311_v4 = vcombine.high %v2138_v62, %v2142_v63  ;;  %v4310_v14 = vcombine.low %v2138_v62, %v2142_v63  ;;  %v2198_v62 = vld [vmem:[%s6448_s2 + $0x7e0] sm:$0xff] }
 0x1db   :  { %3514 = vmatprep.mubr.bf16.mxu0 %v5851_v6  ;;  %3596 = vmatprep.mubr.bf16.mxu1 %v5851_v6  ;;  %v4313_v8 = vcombine.high %v2139_v0, %v2143_v1  ;;  %v2187_v55 = vld [vmem:[%s6448_s2 + $0x788] sm:$0xff] }
 0x1dc   :  { %3515 = vmatmul.mubr.bf16.vlgmr.msra.gmra.mrb[4].mxu0 %v5853_v7  ;;  %3597 = vmatmul.mubr.bf16.vlgmr.msra.gmra.mrb[4].mxu1 %v5853_v7  ;;  %v2191_v30 = vld [vmem:[%s6448_s2 + $0x7a8] sm:$0xff] }
 0x1dd   :  { %3524 = vmatpush1.bf16.msra.mxu0 %v4246_v50  ;;  %3606 = vmatpush1.bf16.msra.mxu1 %v4248_v53  ;;  %v4295_v50 = vcombine.high %v2122_v44, %v2126_v45  ;;  %v4297_v53 = vcombine.high %v2123_v46, %v2127_v47  ;;  %v2182_v44 = vld [vmem:[%s6448_s2 + $0x760] sm:$0xff]  ;;  %v2179_v45 = vld [vmem:[%s6448_s2 + $0x748] sm:$0xff] }
 0x1de   :  { %3555 = vmatprep.mubr.bf16.mxu0 %v5869_v15  ;;  %3637 = vmatprep.mubr.bf16.mxu1 %v5869_v15  ;;  %v2183_v46 = vld [vmem:[%s6448_s2 + $0x768] sm:$0xff] }
 0x1df   :  { %3525 = vmatprep.subr.bf16.mxu0 %v4255_v9  ;;  %3607 = vmatprep.subr.bf16.mxu1 %v4257_v10  ;;  %v2146_v9 = vld [vmem:[%s6448_s2 + $0x640] sm:$0xff]  ;;  %v2195_v63 = vld [vmem:[%s6448_s2 + $0x7c8] sm:$0xff] }
 0x1e0   :  { %v2150_v10 = vld [vmem:[%s6448_s2 + $0x660] sm:$0xff] }
 0x1e1   :  { %3526 = vmatpush1.bf16.msra.mxu0 %v4254_v17  ;;  %3608 = vmatpush1.bf16.msra.mxu1 %v4256_v18  ;;  %v4312_v17 = vcombine.low %v2139_v0, %v2143_v1  ;;  %v4319_v18 = vcombine.high %v2146_v9, %v2150_v10  ;;  %v4318_v25 = vcombine.low %v2146_v9, %v2150_v10  ;;  %v2199_v0 = vld [vmem:[%s6448_s2 + $0x7e8] sm:$0xff]  ;;  %v1952_v9 = vld [vmem:[%s6448_s2 + $0x30] sm:$0xff]  ;;  %v1949_v10 = vld [vmem:[%s6448_s2 + $0x18] sm:$0xff] }
 0x1e2   :  { %3527 = vmatprep.subr.bf16.mxu0 %v4263_v19  ;;  %3609 = vmatprep.subr.bf16.mxu1 %v4265_v20  ;;  %v4321_v19 = vcombine.high %v2147_v12, %v2151_v13  ;;  %v2154_v20 = vld [vmem:[%s6448_s2 + $0x680] sm:$0xff] }
 0x1e3   :  { %v4326_v32 = vcombine.low %v2154_v20, %v2158_v22 }
 0x1e5   :  { %3528 = vmatpush1.bf16.msra.mxu0 %v4262_v26  ;;  %3610 = vmatpush1.bf16.msra.mxu1 %v4264_v27  ;;  %v4320_v26 = vcombine.low %v2147_v12, %v2151_v13  ;;  %v4327_v27 = vcombine.high %v2154_v20, %v2158_v22  ;;  %v1953_v12 = vld [vmem:[%s6448_s2 + $0x38] sm:$0xff]  ;;  %v1956_v20 = vld [vmem:[%s6448_s2 + $0x50] sm:$0xff] }
 0x1e6   :  { %3529 = vmatprep.subr.bf16.mxu0 %v4271_v28  ;;  %3611 = vmatprep.subr.bf16.mxu1 %v4273_v29  ;;  %v4329_v28 = vcombine.high %v2155_v23, %v2159_v24  ;;  %v2162_v29 = vld [vmem:[%s6448_s2 + $0x6c0] sm:$0xff]  ;;  %v1960_v22 = vld [vmem:[%s6448_s2 + $0x70] sm:$0xff] }
 0x1e7   :  { %v4334_v39 = vcombine.low %v2162_v29, %v2166_v16 }
 0x1e9   :  { %3530 = vmatpush1.bf16.msra.mxu0 %v4270_v33  ;;  %3612 = vmatpush1.bf16.msra.mxu1 %v4272_v34  ;;  %v4328_v33 = vcombine.low %v2155_v23, %v2159_v24  ;;  %v4335_v34 = vcombine.high %v2162_v29, %v2166_v16  ;;  %v1957_v23 = vld [vmem:[%s6448_s2 + $0x58] sm:$0xff]  ;;  %v1964_v29 = vld [vmem:[%s6448_s2 + $0x90] sm:$0xff] }
 0x1ea   :  { %3531 = vmatprep.subr.bf16.mxu0 %v4279_v35  ;;  %3613 = vmatprep.subr.bf16.mxu1 %v4281_v36  ;;  %v4337_v35 = vcombine.high %v2163_v11, %v2167_v31  ;;  %v2170_v36 = vld [vmem:[%s6448_s2 + $0x700] sm:$0xff]  ;;  %v1968_v16 = vld [vmem:[%s6448_s2 + $0xb0] sm:$0xff] }
 0x1eb   :  { %v4342_v47 = vcombine.low %v2170_v36, %v2174_v37 }
 0x1ed   :  { %3532 = vmatpush1.bf16.msra.mxu0 %v4278_v40  ;;  %3614 = vmatpush1.bf16.msra.mxu1 %v4280_v41  ;;  %v4336_v40 = vcombine.low %v2163_v11, %v2167_v31  ;;  %v4343_v41 = vcombine.high %v2170_v36, %v2174_v37  ;;  %v1965_v11 = vld [vmem:[%s6448_s2 + $0x98] sm:$0xff]  ;;  %v1972_v36 = vld [vmem:[%s6448_s2 + $0xd0] sm:$0xff] }
 0x1ee   :  { %3533 = vmatprep.subr.bf16.mxu0 %v4287_v42  ;;  %3615 = vmatprep.subr.bf16.mxu1 %v4289_v43  ;;  %v4345_v42 = vcombine.high %v2171_v38, %v2175_v21  ;;  %v2178_v43 = vld [vmem:[%s6448_s2 + $0x740] sm:$0xff]  ;;  %v1969_v31 = vld [vmem:[%s6448_s2 + $0xb8] sm:$0xff]  ;;  %v1976_v37 = vld [vmem:[%s6448_s2 + $0xf0] sm:$0xff] }
 0x1ef   :  { %v4350_v57 = vcombine.low %v2178_v43, %v2182_v44 }
 0x1f1   :  { %3534 = vmatpush1.bf16.msra.mxu0 %v4286_v48  ;;  %3616 = vmatpush1.bf16.msra.mxu1 %v4288_v49  ;;  %v4344_v48 = vcombine.low %v2171_v38, %v2175_v21  ;;  %v4351_v49 = vcombine.high %v2178_v43, %v2182_v44  ;;  %v1973_v38 = vld [vmem:[%s6448_s2 + $0xd8] sm:$0xff]  ;;  %v4138_v21 = vcombine.low %v1964_v29, %v1968_v16  ;;  %v1984_v43 = vld [vmem:[%s6448_s2 + $0x130] sm:$0xff] }
 0x1f2   :  { %3535 = vmatprep.subr.bf16.mxu0 %v4295_v50  ;;  %3617 = vmatprep.subr.bf16.mxu1 %v4297_v53  ;;  %v4353_v50 = vcombine.high %v2179_v45, %v2183_v46  ;;  %v2186_v53 = vld [vmem:[%s6448_s2 + $0x780] sm:$0xff]  ;;  %v1981_v44 = vld [vmem:[%s6448_s2 + $0x118] sm:$0xff] }
 0x1f3   :  { %v4358_v1 = vcombine.low %v2186_v53, %v2190_v54 }
 0x1f5   :  { %3536 = vmatpush1.bf16.msra.mxu0 %v4294_v58  ;;  %3618 = vmatpush1.bf16.msra.mxu1 %v4296_v59  ;;  %v4352_v58 = vcombine.low %v2179_v45, %v2183_v46  ;;  %v4359_v59 = vcombine.high %v2186_v53, %v2190_v54  ;;  %v1985_v45 = vld [vmem:[%s6448_s2 + $0x138] sm:$0xff]  ;;  %v4146_v46 = vcombine.low %v1972_v36, %v1976_v37  ;;  %v1992_v53 = vld [vmem:[%s6448_s2 + $0x170] sm:$0xff] }
 0x1f6   :  { %3537 = vmatprep.subr.bf16.mxu0 %v4303_v60  ;;  %3619 = vmatprep.subr.bf16.mxu1 %v4305_v61  ;;  %v4361_v60 = vcombine.high %v2187_v55, %v2191_v30  ;;  %v2194_v61 = vld [vmem:[%s6448_s2 + $0x7c0] sm:$0xff]  ;;  %v1989_v54 = vld [vmem:[%s6448_s2 + $0x158] sm:$0xff] }
 0x1f7   :  { %v4366_v13 = vcombine.low %v2194_v61, %v2198_v62 }
 0x1f9   :  { %3538 = vmatpush1.bf16.msra.mxu0 %v4302_v2  ;;  %3620 = vmatpush1.bf16.msra.mxu1 %v4304_v3  ;;  %v4360_v2 = vcombine.low %v2187_v55, %v2191_v30  ;;  %v4367_v3 = vcombine.high %v2194_v61, %v2198_v62  ;;  %v1993_v55 = vld [vmem:[%s6448_s2 + $0x178] sm:$0xff]  ;;  %v2000_v61 = vld [vmem:[%s6448_s2 + $0x1b0] sm:$0xff] }
 0x1fa   :  { %3539 = vmatprep.subr.bf16.mxu0 %v4311_v4  ;;  %3621 = vmatprep.subr.bf16.mxu1 %v4313_v8  ;;  %v4369_v4 = vcombine.high %v2195_v63, %v2199_v0  ;;  %v1948_v8 = vld [vmem:[%s6448_s2 + $0x10] sm:$0xff]  ;;  %v1997_v62 = vld [vmem:[%s6448_s2 + $0x198] sm:$0xff] }
 0x1fb   :  { %v4122_v24 = vcombine.low %v1948_v8, %v1952_v9 }
 0x1fd   :  { %3540 = vmatpush1.bf16.msra.mxu0 %v4310_v14  ;;  %3622 = vmatpush1.bf16.msra.mxu1 %v4312_v17  ;;  %v4368_v14 = vcombine.low %v2195_v63, %v2199_v0  ;;  %v1940_v17 = vmax.f32 %v5837_v56, 0.0  ;;  %v1961_v56 = vld [vmem:[%s6448_s2 + $0x78] sm:$0xff] }
 0x1fe   :  { %3541 = vmatprep.subr.bf16.mxu0 %v4319_v18  ;;  %3623 = vmatprep.subr.bf16.mxu1 %v4321_v19  ;;  %v4123_v18 = vcombine.high %v1948_v8, %v1952_v9  ;;  %v4125_v19 = vcombine.high %v1949_v10, %v1953_v12  ;;  %v2001_v63 = vld [vmem:[%s6448_s2 + $0x1b8] sm:$0xff]  ;;  %v2008_v8 = vld [vmem:[%s6448_s2 + $0x1f0] sm:$0xff] }
 0x1ff   :  { %v2005_v9 = vld [vmem:[%s6448_s2 + $0x1d8] sm:$0xff] }
 0x201   :  { %3542 = vmatpush1.bf16.msra.mxu0 %v4318_v25  ;;  %3624 = vmatpush1.bf16.msra.mxu1 %v4320_v26  ;;  %v6056_v25 = vpack.c.bf16 %v1940_v17, %v1940_v17  ;;  %v4124_v26 = vcombine.low %v1949_v10, %v1953_v12  ;;  %v2009_v10 = vld [vmem:[%s6448_s2 + $0x1f8] sm:$0xff] }
 0x202   :  { %3543 = vmatprep.subr.bf16.mxu0 %v4327_v27  ;;  %3625 = vmatprep.subr.bf16.mxu1 %v4329_v28  ;;  %v4131_v27 = vcombine.high %v1956_v20, %v1960_v22  ;;  %v4133_v28 = vcombine.high %v1957_v23, %v1961_v56  ;;  %v4181_v17 = vcombine.high %v2005_v9, %v2009_v10 }
 0x205   :  { %3544 = vmatpush1.bf16.msra.mxu0 %v4326_v32  ;;  %3626 = vmatpush1.bf16.msra.mxu1 %v4328_v33  ;;  %v4130_v32 = vcombine.low %v1956_v20, %v1960_v22  ;;  %v4132_v33 = vcombine.low %v1957_v23, %v1961_v56  ;;  %v2013_v20 = vld [vmem:[%s6448_s2 + $0x218] sm:$0xff]  ;;  %v4180_v56 = vcombine.low %v2005_v9, %v2009_v10 }
 0x206   :  { %3545 = vmatprep.subr.bf16.mxu0 %v4335_v34  ;;  %3627 = vmatprep.subr.bf16.mxu1 %v4337_v35  ;;  %v4139_v34 = vcombine.high %v1964_v29, %v1968_v16  ;;  %v4141_v35 = vcombine.high %v1965_v11, %v1969_v31  ;;  %v2017_v22 = vld [vmem:[%s6448_s2 + $0x238] sm:$0xff] }
 0x207   :  { %v2021_v29 = vld [vmem:[%s6448_s2 + $0x258] sm:$0xff] }
 0x208   :  { %v2025_v16 = vld [vmem:[%s6448_s2 + $0x278] sm:$0xff] }
 0x209   :  { %3546 = vmatpush1.bf16.msra.mxu0 %v4334_v39  ;;  %3628 = vmatpush1.bf16.msra.mxu1 %v4336_v40  ;;  %v4140_v39 = vcombine.low %v1965_v11, %v1969_v31  ;;  %v4147_v40 = vcombine.high %v1972_v36, %v1976_v37  ;;  %v4188_v31 = vcombine.low %v2013_v20, %v2017_v22  ;;  %v2029_v36 = vld [vmem:[%s6448_s2 + $0x298] sm:$0xff] }
 0x20a   :  { %3547 = vmatprep.subr.bf16.mxu0 %v4343_v41  ;;  %3629 = vmatprep.subr.bf16.mxu1 %v4345_v42  ;;  %v1980_v42 = vld [vmem:[%s6448_s2 + $0x110] sm:$0xff]  ;;  %v2033_v37 = vld [vmem:[%s6448_s2 + $0x2b8] sm:$0xff] }
 0x20b   :  { %v4154_v30 = vcombine.low %v1980_v42, %v1984_v43 }
 0x20d   :  { %3548 = vmatpush1.bf16.msra.mxu0 %v4342_v47  ;;  %3630 = vmatpush1.bf16.msra.mxu1 %v4344_v48  ;;  %v4155_v48 = vcombine.high %v1980_v42, %v1984_v43  ;;  %v2037_v42 = vld [vmem:[%s6448_s2 + $0x2d8] sm:$0xff] }
 0x20e   :  { %3549 = vmatprep.subr.bf16.mxu0 %v4351_v49  ;;  %3631 = vmatprep.subr.bf16.mxu1 %v4353_v50  ;;  %v4157_v49 = vcombine.high %v1981_v44, %v1985_v45  ;;  %v1988_v50 = vld [vmem:[%s6448_s2 + $0x150] sm:$0xff]  ;;  %v2041_v43 = vld [vmem:[%s6448_s2 + $0x2f8] sm:$0xff] }
 0x20f   :  { %v4162_v0 = vcombine.low %v1988_v50, %v1992_v53 }
 0x211   :  { %3550 = vmatpush1.bf16.msra.mxu0 %v4350_v57  ;;  %3632 = vmatpush1.bf16.msra.mxu1 %v4352_v58  ;;  %v4156_v57 = vcombine.low %v1981_v44, %v1985_v45  ;;  %v4163_v58 = vcombine.high %v1988_v50, %v1992_v53  ;;  %v4204_v45 = vcombine.low %v2029_v36, %v2033_v37  ;;  %v2045_v50 = vld [vmem:[%s6448_s2 + $0x318] sm:$0xff] }
 0x212   :  { %3551 = vmatprep.subr.bf16.mxu0 %v4359_v59  ;;  %3633 = vmatprep.subr.bf16.mxu1 %v4361_v60  ;;  %v4165_v59 = vcombine.high %v1989_v54, %v1993_v55  ;;  %v1996_v60 = vld [vmem:[%s6448_s2 + $0x190] sm:$0xff]  ;;  %v2049_v53 = vld [vmem:[%s6448_s2 + $0x338] sm:$0xff] }
 0x213   :  { %v4170_v12 = vcombine.low %v1996_v60, %v2000_v61 }
 0x215   :  { %3552 = vmatpush1.bf16.msra.mxu0 %v4358_v1  ;;  %3634 = vmatpush1.bf16.msra.mxu1 %v4360_v2  ;;  %v4164_v1 = vcombine.low %v1989_v54, %v1993_v55  ;;  %v4171_v2 = vcombine.high %v1996_v60, %v2000_v61  ;;  %v4212_v55 = vcombine.low %v2037_v42, %v2041_v43  ;;  %v2053_v60 = vld [vmem:[%s6448_s2 + $0x358] sm:$0xff] }
 0x216   :  { %3553 = vmatprep.subr.bf16.mxu0 %v4367_v3  ;;  %3635 = vmatprep.subr.bf16.mxu1 %v4369_v4  ;;  %v4173_v3 = vcombine.high %v1997_v62, %v2001_v63  ;;  %v2004_v4 = vld [vmem:[%s6448_s2 + $0x1d0] sm:$0xff]  ;;  %v2057_v61 = vld [vmem:[%s6448_s2 + $0x378] sm:$0xff] }
 0x217   :  { %v4178_v23 = vcombine.low %v2004_v4, %v2008_v8  ;;  %v4228_v10 = vcombine.low %v2053_v60, %v2057_v61 }
 0x219   :  { %3554 = vmatpush1.bf16.msra.mxu0 %v4366_v13  ;;  %3636 = vmatpush1.bf16.msra.mxu1 %v4368_v14  ;;  %v4172_v13 = vcombine.low %v1997_v62, %v2001_v63  ;;  %v4179_v14 = vcombine.high %v2004_v4, %v2008_v8  ;;  %v4220_v63 = vcombine.low %v2045_v50, %v2049_v53  ;;  %v2061_v4 = vld [vmem:[%s6448_s2 + $0x398] sm:$0xff] }
 0x21a   :  { %3646 = vmatprep.subr.bf16.mxu0 %v4123_v18  ;;  %3728 = vmatprep.subr.bf16.mxu1 %v4125_v19  ;;  %v2012_v18 = vld [vmem:[%s6448_s2 + $0x210] sm:$0xff]  ;;  %v2065_v8 = vld [vmem:[%s6448_s2 + $0x3b8] sm:$0xff] }
 0x21b   :  { %v2016_v19 = vld [vmem:[%s6448_s2 + $0x230] sm:$0xff] }
 0x21c   :  { %3556 = vmatmul.mubr.bf16.vlgmr.msra.gmra.mrb[4].mxu0 %v6056_v25  ;;  %3638 = vmatmul.mubr.bf16.vlgmr.msra.gmra.mrb[4].mxu1 %v6056_v25  ;;  %v4186_v11 = vcombine.low %v2012_v18, %v2016_v19 }
 0x21d   :  { %3647 = vmatpush1.bf16.msra.mxu0 %v4122_v24  ;;  %3678 = vmatprep.mubr.bf16.mxu0 %v5851_v6  ;;  %v4187_v24 = vcombine.high %v2012_v18, %v2016_v19  ;;  %v2069_v18 = vld [vmem:[%s6448_s2 + $0x3d8] sm:$0xff] }
 0x21e   :  { %3729 = vmatpush1.bf16.msra.mxu1 %v4124_v26  ;;  %3760 = vmatprep.mubr.bf16.mxu1 %v5851_v6  ;;  %v1977_v6 = vld [vmem:[%s6448_s2 + $0xf8] sm:$0xff]  ;;  %v4189_v26 = vcombine.high %v2013_v20, %v2017_v22  ;;  %v4236_v22 = vcombine.low %v2061_v4, %v2065_v8 }
 0x21f   :  { %3648 = vmatprep.subr.bf16.mxu0 %v4131_v27  ;;  %3730 = vmatprep.subr.bf16.mxu1 %v4133_v28  ;;  %v4149_v41 = vcombine.high %v1973_v38, %v1977_v6  ;;  %v4148_v47 = vcombine.low %v1973_v38, %v1977_v6  ;;  %v2020_v27 = vld [vmem:[%s6448_s2 + $0x250] sm:$0xff]  ;;  %v4196_v6 = vcombine.low %v2021_v29, %v2025_v16  ;;  %v2073_v19 = vld [vmem:[%s6448_s2 + $0x3f8] sm:$0xff] }
 0x220   :  { %v2024_v28 = vld [vmem:[%s6448_s2 + $0x270] sm:$0xff] }
 0x221   :  { %3649 = vmatpush1.bf16.msra.mxu0 %v4130_v32  ;;  %v4195_v32 = vcombine.high %v2020_v27, %v2024_v28  ;;  %v4194_v38 = vcombine.low %v2020_v27, %v2024_v28  ;;  %v2077_v27 = vld [vmem:[%s6448_s2 + $0x418] sm:$0xff] }
 0x222   :  { %3731 = vmatpush1.bf16.msra.mxu1 %v4132_v33  ;;  %3650 = vmatprep.subr.bf16.mxu0 %v4139_v34  ;;  %v4197_v33 = vcombine.high %v2021_v29, %v2025_v16  ;;  %v2028_v34 = vld [vmem:[%s6448_s2 + $0x290] sm:$0xff]  ;;  %v2081_v28 = vld [vmem:[%s6448_s2 + $0x438] sm:$0xff]  ;;  %v4244_v16 = vcombine.low %v2069_v18, %v2073_v19 }
 0x223   :  { %3732 = vmatprep.subr.bf16.mxu1 %v4141_v35  ;;  %v2032_v35 = vld [vmem:[%s6448_s2 + $0x2b0] sm:$0xff] }
 0x224   :  { %v4202_v44 = vcombine.low %v2028_v34, %v2032_v35 }
 0x225   :  { %3651 = vmatpush1.bf16.msra.mxu0 %v4138_v21  ;;  %v4203_v21 = vcombine.high %v2028_v34, %v2032_v35  ;;  %v2085_v35 = vld [vmem:[%s6448_s2 + $0x458] sm:$0xff] }
 0x226   :  { %3733 = vmatpush1.bf16.msra.mxu1 %v4140_v39  ;;  %3652 = vmatprep.subr.bf16.mxu0 %v4147_v40  ;;  %v4205_v39 = vcombine.high %v2029_v36, %v2033_v37  ;;  %v2036_v40 = vld [vmem:[%s6448_s2 + $0x2d0] sm:$0xff]  ;;  %v2089_v36 = vld [vmem:[%s6448_s2 + $0x478] sm:$0xff]  ;;  %v4252_v37 = vcombine.low %v2077_v27, %v2081_v28 }
 0x227   :  { %3734 = vmatprep.subr.bf16.mxu1 %v4149_v41  ;;  %v2040_v41 = vld [vmem:[%s6448_s2 + $0x2f0] sm:$0xff] }
 0x228   :  { %v4210_v54 = vcombine.low %v2036_v40, %v2040_v41 }
 0x229   :  { %3653 = vmatpush1.bf16.msra.mxu0 %v4146_v46  ;;  %v4211_v46 = vcombine.high %v2036_v40, %v2040_v41  ;;  %v2093_v40 = vld [vmem:[%s6448_s2 + $0x498] sm:$0xff] }
 0x22a   :  { %3735 = vmatpush1.bf16.msra.mxu1 %v4148_v47  ;;  %3654 = vmatprep.subr.bf16.mxu0 %v4155_v48  ;;  %v4213_v47 = vcombine.high %v2037_v42, %v2041_v43  ;;  %v2044_v48 = vld [vmem:[%s6448_s2 + $0x310] sm:$0xff]  ;;  %v2097_v41 = vld [vmem:[%s6448_s2 + $0x4b8] sm:$0xff]  ;;  %v4260_v43 = vcombine.low %v2085_v35, %v2089_v36 }
 0x22b   :  { %3736 = vmatprep.subr.bf16.mxu1 %v4157_v49  ;;  %v2048_v49 = vld [vmem:[%s6448_s2 + $0x330] sm:$0xff] }
 0x22c   :  { %v4218_v62 = vcombine.low %v2044_v48, %v2048_v49 }
 0x22d   :  { %3655 = vmatpush1.bf16.msra.mxu0 %v4154_v30  ;;  %v4219_v30 = vcombine.high %v2044_v48, %v2048_v49  ;;  %v2105_v48 = vld [vmem:[%s6448_s2 + $0x4f8] sm:$0xff]  ;;  %v4268_v49 = vcombine.low %v2093_v40, %v2097_v41 }
 0x22e   :  { %3737 = vmatpush1.bf16.msra.mxu1 %v4156_v57  ;;  %3656 = vmatprep.subr.bf16.mxu0 %v4163_v58  ;;  %v4221_v57 = vcombine.high %v2045_v50, %v2049_v53  ;;  %v2052_v58 = vld [vmem:[%s6448_s2 + $0x350] sm:$0xff] }
 0x22f   :  { %3738 = vmatprep.subr.bf16.mxu1 %v4165_v59  ;;  %v2056_v59 = vld [vmem:[%s6448_s2 + $0x370] sm:$0xff] }
 0x230   :  { %v4226_v9 = vcombine.low %v2052_v58, %v2056_v59 }
 0x231   :  { %3657 = vmatpush1.bf16.msra.mxu0 %v4162_v0  ;;  %v4227_v0 = vcombine.high %v2052_v58, %v2056_v59 }
 0x232   :  { %3739 = vmatpush1.bf16.msra.mxu1 %v4164_v1  ;;  %3658 = vmatprep.subr.bf16.mxu0 %v4171_v2  ;;  %v4229_v1 = vcombine.high %v2053_v60, %v2057_v61  ;;  %v2060_v2 = vld [vmem:[%s6448_s2 + $0x390] sm:$0xff] }
 0x233   :  { %3740 = vmatprep.subr.bf16.mxu1 %v4173_v3  ;;  %v2064_v3 = vld [vmem:[%s6448_s2 + $0x3b0] sm:$0xff] }
 0x234   :  { %v4234_v20 = vcombine.low %v2060_v2, %v2064_v3 }
 0x235   :  { %3659 = vmatpush1.bf16.msra.mxu0 %v4170_v12  ;;  %v4235_v12 = vcombine.high %v2060_v2, %v2064_v3 }
 0x236   :  { %3741 = vmatpush1.bf16.msra.mxu1 %v4172_v13  ;;  %3660 = vmatprep.subr.bf16.mxu0 %v4179_v14  ;;  %v4237_v13 = vcombine.high %v2061_v4, %v2065_v8  ;;  %v2068_v14 = vld [vmem:[%s6448_s2 + $0x3d0] sm:$0xff] }
 0x237   :  { %3742 = vmatprep.subr.bf16.mxu1 %v4181_v17  ;;  %v2072_v17 = vld [vmem:[%s6448_s2 + $0x3f0] sm:$0xff] }
 0x238   :  { %v4242_v29 = vcombine.low %v2068_v14, %v2072_v17 }
 0x239   :  { %3661 = vmatpush1.bf16.msra.mxu0 %v4178_v23  ;;  %v4243_v23 = vcombine.high %v2068_v14, %v2072_v17 }
 0x23a   :  { %3743 = vmatpush1.bf16.msra.mxu1 %v4180_v56  ;;  %3662 = vmatprep.subr.bf16.mxu0 %v4187_v24  ;;  %v4245_v56 = vcombine.high %v2069_v18, %v2073_v19  ;;  %v2076_v24 = vld [vmem:[%s6448_s2 + $0x410] sm:$0xff] }
 0x23b   :  { %3744 = vmatprep.subr.bf16.mxu1 %v4189_v26  ;;  %v2080_v26 = vld [vmem:[%s6448_s2 + $0x430] sm:$0xff] }
 0x23c   :  { %v4250_v34 = vcombine.low %v2076_v24, %v2080_v26 }
 0x23d   :  { %3663 = vmatpush1.bf16.msra.mxu0 %v4186_v11  ;;  %v4251_v11 = vcombine.high %v2076_v24, %v2080_v26 }
 0x23e   :  { %3745 = vmatpush1.bf16.msra.mxu1 %v4188_v31  ;;  %3664 = vmatprep.subr.bf16.mxu0 %v4195_v32  ;;  %v4253_v31 = vcombine.high %v2077_v27, %v2081_v28  ;;  %v2084_v32 = vld [vmem:[%s6448_s2 + $0x450] sm:$0xff] }
 0x23f   :  { %3746 = vmatprep.subr.bf16.mxu1 %v4197_v33  ;;  %v2088_v33 = vld [vmem:[%s6448_s2 + $0x470] sm:$0xff] }
 0x240   :  { %v4258_v42 = vcombine.low %v2084_v32, %v2088_v33 }
 0x241   :  { %3665 = vmatpush1.bf16.msra.mxu0 %v4194_v38  ;;  %v4259_v38 = vcombine.high %v2084_v32, %v2088_v33 }
 0x242   :  { %3747 = vmatpush1.bf16.msra.mxu1 %v4196_v6  ;;  %3666 = vmatprep.subr.bf16.mxu0 %v4203_v21  ;;  %v2092_v6 = vld [vmem:[%s6448_s2 + $0x490] sm:$0xff] }
 0x243   :  { %3748 = vmatprep.subr.bf16.mxu1 %v4205_v39  ;;  %v2096_v21 = vld [vmem:[%s6448_s2 + $0x4b0] sm:$0xff]  ;;  %v4261_v39 = vcombine.high %v2085_v35, %v2089_v36 }
 0x244   :  { %v2148_v36 = vld [vmem:[%s6448_s2 + $0x650] sm:$0xff] }
 0x245   :  { %3667 = vmatpush1.bf16.msra.mxu0 %v4202_v44  ;;  %v4267_v44 = vcombine.high %v2092_v6, %v2096_v21 }
 0x246   :  { %3749 = vmatpush1.bf16.msra.mxu1 %v4204_v45  ;;  %3668 = vmatprep.subr.bf16.mxu0 %v4211_v46  ;;  %v4269_v45 = vcombine.high %v2093_v40, %v2097_v41  ;;  %v2100_v46 = vld [vmem:[%s6448_s2 + $0x4d0] sm:$0xff] }
 0x247   :  { %3750 = vmatprep.subr.bf16.mxu1 %v4213_v47  ;;  %v2104_v47 = vld [vmem:[%s6448_s2 + $0x4f0] sm:$0xff] }
 0x248   :  { %v4275_v50 = vcombine.high %v2100_v46, %v2104_v47  ;;  %v4274_v58 = vcombine.low %v2100_v46, %v2104_v47  ;;  %v2156_v40 = vld [vmem:[%s6448_s2 + $0x690] sm:$0xff] }
 0x249   :  { %3669 = vmatpush1.bf16.msra.mxu0 %v4210_v54  ;;  %v2108_v54 = vld [vmem:[%s6448_s2 + $0x510] sm:$0xff] }
 0x24a   :  { %3751 = vmatpush1.bf16.msra.mxu1 %v4212_v55  ;;  %3670 = vmatprep.subr.bf16.mxu0 %v4219_v30  ;;  %v2112_v55 = vld [vmem:[%s6448_s2 + $0x530] sm:$0xff]  ;;  %v2109_v30 = vld [vmem:[%s6448_s2 + $0x518] sm:$0xff] }
 0x24b   :  { %3752 = vmatprep.subr.bf16.mxu1 %v4221_v57  ;;  %v2113_v57 = vld [vmem:[%s6448_s2 + $0x538] sm:$0xff]  ;;  %v4283_v60 = vcombine.high %v2108_v54, %v2112_v55  ;;  %v4282_v2 = vcombine.low %v2108_v54, %v2112_v55  ;;  %v2160_v41 = vld [vmem:[%s6448_s2 + $0x6b0] sm:$0xff] }
 0x24c   :  { %v4285_v61 = vcombine.high %v2109_v30, %v2113_v57  ;;  %v4284_v3 = vcombine.low %v2109_v30, %v2113_v57  ;;  %v4331_v46 = vcombine.high %v2156_v40, %v2160_v41  ;;  %v2172_v30 = vld [vmem:[%s6448_s2 + $0x710] sm:$0xff] }
 0x24d   :  { %3671 = vmatpush1.bf16.msra.mxu0 %v4218_v62  ;;  %v2116_v62 = vld [vmem:[%s6448_s2 + $0x550] sm:$0xff] }
 0x24e   :  { %3753 = vmatpush1.bf16.msra.mxu1 %v4220_v63  ;;  %3672 = vmatprep.subr.bf16.mxu0 %v4227_v0  ;;  %v2120_v63 = vld [vmem:[%s6448_s2 + $0x570] sm:$0xff]  ;;  %v2117_v0 = vld [vmem:[%s6448_s2 + $0x558] sm:$0xff] }
 0x24f   :  { %3754 = vmatprep.subr.bf16.mxu1 %v4229_v1  ;;  %v2121_v1 = vld [vmem:[%s6448_s2 + $0x578] sm:$0xff]  ;;  %v4291_v4 = vcombine.high %v2116_v62, %v2120_v63  ;;  %v4290_v14 = vcombine.low %v2116_v62, %v2120_v63  ;;  %v2176_v57 = vld [vmem:[%s6448_s2 + $0x730] sm:$0xff] }
 0x250   :  { %v4293_v8 = vcombine.high %v2117_v0, %v2121_v1  ;;  %v4292_v17 = vcombine.low %v2117_v0, %v2121_v1  ;;  %v4347_v62 = vcombine.high %v2172_v30, %v2176_v57  ;;  %v2180_v0 = vld [vmem:[%s6448_s2 + $0x750] sm:$0xff] }
 0x251   :  { %3673 = vmatpush1.bf16.msra.mxu0 %v4226_v9  ;;  %v2124_v9 = vld [vmem:[%s6448_s2 + $0x590] sm:$0xff] }
 0x252   :  { %3755 = vmatpush1.bf16.msra.mxu1 %v4228_v10  ;;  %3674 = vmatprep.subr.bf16.mxu0 %v4235_v12  ;;  %v2128_v10 = vld [vmem:[%s6448_s2 + $0x5b0] sm:$0xff]  ;;  %v2125_v12 = vld [vmem:[%s6448_s2 + $0x598] sm:$0xff] }
 0x253   :  { %3756 = vmatprep.subr.bf16.mxu1 %v4237_v13  ;;  %v2129_v13 = vld [vmem:[%s6448_s2 + $0x5b8] sm:$0xff]  ;;  %v4299_v18 = vcombine.high %v2124_v9, %v2128_v10  ;;  %v4298_v24 = vcombine.low %v2124_v9, %v2128_v10  ;;  %v2184_v1 = vld [vmem:[%s6448_s2 + $0x770] sm:$0xff] }
 0x254   :  { %v4301_v19 = vcombine.high %v2125_v12, %v2129_v13  ;;  %v4300_v26 = vcombine.low %v2125_v12, %v2129_v13  ;;  %v4355_v9 = vcombine.high %v2180_v0, %v2184_v1  ;;  %v2188_v12 = vld [vmem:[%s6448_s2 + $0x790] sm:$0xff] }
 0x255   :  { %3675 = vmatpush1.bf16.msra.mxu0 %v4234_v20  ;;  %v2132_v20 = vld [vmem:[%s6448_s2 + $0x5d0] sm:$0xff] }
 0x256   :  { %3757 = vmatpush1.bf16.msra.mxu1 %v4236_v22  ;;  %3676 = vmatprep.subr.bf16.mxu0 %v4243_v23  ;;  %v2136_v22 = vld [vmem:[%s6448_s2 + $0x5f0] sm:$0xff]  ;;  %v2133_v23 = vld [vmem:[%s6448_s2 + $0x5d8] sm:$0xff] }
 0x257   :  { %3758 = vmatprep.subr.bf16.mxu1 %v4245_v56  ;;  %v2137_v56 = vld [vmem:[%s6448_s2 + $0x5f8] sm:$0xff]  ;;  %v4307_v27 = vcombine.high %v2132_v20, %v2136_v22  ;;  %v4306_v32 = vcombine.low %v2132_v20, %v2136_v22  ;;  %v2192_v13 = vld [vmem:[%s6448_s2 + $0x7b0] sm:$0xff] }
 0x258   :  { %v4309_v28 = vcombine.high %v2133_v23, %v2137_v56  ;;  %v4308_v33 = vcombine.low %v2133_v23, %v2137_v56  ;;  %v4363_v20 = vcombine.high %v2188_v12, %v2192_v13  ;;  %v2196_v23 = vld [vmem:[%s6448_s2 + $0x7d0] sm:$0xff] }
 0x259   :  { %3677 = vmatpush1.bf16.msra.mxu0 %v4242_v29  ;;  %v2140_v29 = vld [vmem:[%s6448_s2 + $0x610] sm:$0xff] }
 0x25a   :  { %3759 = vmatpush1.bf16.msra.mxu1 %v4244_v16  ;;  %3687 = vmatprep.subr.bf16.mxu0 %v4251_v11  ;;  %v2144_v16 = vld [vmem:[%s6448_s2 + $0x630] sm:$0xff]  ;;  %v2141_v11 = vld [vmem:[%s6448_s2 + $0x618] sm:$0xff] }
 0x25b   :  { %3769 = vmatprep.subr.bf16.mxu1 %v4253_v31  ;;  %v2145_v31 = vld [vmem:[%s6448_s2 + $0x638] sm:$0xff]  ;;  %v2200_v56 = vld [vmem:[%s6448_s2 + $0x7f0] sm:$0xff] }
 0x25c   :  { %3679 = vmatmul.mubr.bf16.vlgmr.msra.gmra.mrb[8].mxu0 %v5853_v7  ;;  %v4317_v35 = vcombine.high %v2141_v11, %v2145_v31 }
 0x25d   :  { %3761 = vmatmul.mubr.bf16.vlgmr.msra.gmra.mrb[8].mxu1 %v5853_v7  ;;  %3688 = vmatpush1.bf16.msra.mxu0 %v4250_v34  ;;  %v2101_v7 = vld [vmem:[%s6448_s2 + $0x4d8] sm:$0xff]  ;;  %v4315_v34 = vcombine.high %v2140_v29, %v2144_v16 }
 0x25e   :  { %3719 = vmatprep.mubr.bf16.mxu0 %v5869_v15  ;;  %3770 = vmatpush1.bf16.msra.mxu1 %v4252_v37  ;;  %v4277_v53 = vcombine.high %v2101_v7, %v2105_v48  ;;  %v4276_v59 = vcombine.low %v2101_v7, %v2105_v48  ;;  %v2153_v37 = vld [vmem:[%s6448_s2 + $0x678] sm:$0xff]  ;;  %v2164_v7 = vld [vmem:[%s6448_s2 + $0x6d0] sm:$0xff] }
 0x25f   :  { %3801 = vmatprep.mubr.bf16.mxu1 %v5869_v15  ;;  %3689 = vmatprep.subr.bf16.mxu0 %v4259_v38  ;;  %v4266_v15 = vcombine.low %v2092_v6, %v2096_v21  ;;  %v4314_v38 = vcombine.low %v2140_v29, %v2144_v16  ;;  %v4316_v6 = vcombine.low %v2141_v11, %v2145_v31  ;;  %v2168_v48 = vld [vmem:[%s6448_s2 + $0x6f0] sm:$0xff] }
 0x260   :  { %3771 = vmatprep.subr.bf16.mxu1 %v4261_v39  ;;  %v4323_v21 = vcombine.high %v2148_v36, %v2152_v51  ;;  %v4325_v39 = vcombine.high %v2149_v5, %v2153_v37  ;;  %v4339_v54 = vcombine.high %v2164_v7, %v2168_v48  ;;  %v4371_v29 = vcombine.high %v2196_v23, %v2200_v56 }
 0x261   :  { %3690 = vmatpush1.bf16.msra.mxu0 %v4258_v42  ;;  %v2157_v42 = vld [vmem:[%s6448_s2 + $0x698] sm:$0xff]  ;;  %v4370_v11 = vcombine.low %v2196_v23, %v2200_v56 }
 0x262   :  { %3772 = vmatpush1.bf16.msra.mxu1 %v4260_v43  ;;  %3691 = vmatprep.subr.bf16.mxu0 %v4267_v44  ;;  %v2161_v43 = vld [vmem:[%s6448_s2 + $0x6b8] sm:$0xff]  ;;  %v4322_v44 = vcombine.low %v2148_v36, %v2152_v51 }
 0x263   :  { %3773 = vmatprep.subr.bf16.mxu1 %v4269_v45  ;;  %v4324_v45 = vcombine.low %v2149_v5, %v2153_v37  ;;  %v4333_v47 = vcombine.high %v2157_v42, %v2161_v43 }
 0x265   :  { %3692 = vmatpush1.bf16.msra.mxu0 %v4266_v15  ;;  %v2165_v15 = vld [vmem:[%s6448_s2 + $0x6d8] sm:$0xff] }
 0x266   :  { %3774 = vmatpush1.bf16.msra.mxu1 %v4268_v49  ;;  %3693 = vmatprep.subr.bf16.mxu0 %v4275_v50  ;;  %v2169_v49 = vld [vmem:[%s6448_s2 + $0x6f8] sm:$0xff]  ;;  %v4330_v50 = vcombine.low %v2156_v40, %v2160_v41 }
 0x267   :  { %3775 = vmatprep.subr.bf16.mxu1 %v4277_v53  ;;  %v4332_v53 = vcombine.low %v2157_v42, %v2161_v43  ;;  %v4341_v55 = vcombine.high %v2165_v15, %v2169_v49 }
 0x269   :  { %3694 = vmatpush1.bf16.msra.mxu0 %v4274_v58  ;;  %v2173_v58 = vld [vmem:[%s6448_s2 + $0x718] sm:$0xff] }
 0x26a   :  { %3776 = vmatpush1.bf16.msra.mxu1 %v4276_v59  ;;  %3695 = vmatprep.subr.bf16.mxu0 %v4283_v60  ;;  %v2177_v59 = vld [vmem:[%s6448_s2 + $0x738] sm:$0xff]  ;;  %v4338_v60 = vcombine.low %v2164_v7, %v2168_v48 }
 0x26b   :  { %3777 = vmatprep.subr.bf16.mxu1 %v4285_v61  ;;  %v4340_v61 = vcombine.low %v2165_v15, %v2169_v49  ;;  %v4349_v63 = vcombine.high %v2173_v58, %v2177_v59 }
 0x26d   :  { %3696 = vmatpush1.bf16.msra.mxu0 %v4282_v2  ;;  %v2181_v2 = vld [vmem:[%s6448_s2 + $0x758] sm:$0xff] }
 0x26e   :  { %3778 = vmatpush1.bf16.msra.mxu1 %v4284_v3  ;;  %3697 = vmatprep.subr.bf16.mxu0 %v4291_v4  ;;  %v2185_v3 = vld [vmem:[%s6448_s2 + $0x778] sm:$0xff]  ;;  %v4346_v4 = vcombine.low %v2172_v30, %v2176_v57 }
 0x26f   :  { %3779 = vmatprep.subr.bf16.mxu1 %v4293_v8  ;;  %v4348_v8 = vcombine.low %v2173_v58, %v2177_v59  ;;  %v4357_v10 = vcombine.high %v2181_v2, %v2185_v3 }
 0x271   :  { %3698 = vmatpush1.bf16.msra.mxu0 %v4290_v14  ;;  %v2189_v14 = vld [vmem:[%s6448_s2 + $0x798] sm:$0xff] }
 0x272   :  { %3780 = vmatpush1.bf16.msra.mxu1 %v4292_v17  ;;  %3699 = vmatprep.subr.bf16.mxu0 %v4299_v18  ;;  %v2193_v17 = vld [vmem:[%s6448_s2 + $0x7b8] sm:$0xff]  ;;  %v4354_v18 = vcombine.low %v2180_v0, %v2184_v1 }
 0x273   :  { %3781 = vmatprep.subr.bf16.mxu1 %v4301_v19  ;;  %v4356_v19 = vcombine.low %v2181_v2, %v2185_v3  ;;  %v4365_v22 = vcombine.high %v2189_v14, %v2193_v17 }
 0x275   :  { %3700 = vmatpush1.bf16.msra.mxu0 %v4298_v24  ;;  %v2197_v24 = vld [vmem:[%s6448_s2 + $0x7d8] sm:$0xff] }
 0x276   :  { %3782 = vmatpush1.bf16.msra.mxu1 %v4300_v26  ;;  %3701 = vmatprep.subr.bf16.mxu0 %v4307_v27  ;;  %v2201_v26 = vld [vmem:[%s6448_s2 + $0x7f8] sm:$0xff]  ;;  %v4362_v27 = vcombine.low %v2188_v12, %v2192_v13 }
 0x277   :  { %3783 = vmatprep.subr.bf16.mxu1 %v4309_v28  ;;  %v4364_v28 = vcombine.low %v2189_v14, %v2193_v17  ;;  %v4373_v16 = vcombine.high %v2197_v24, %v2201_v26  ;;  %v4372_v31 = vcombine.low %v2197_v24, %v2201_v26 }
 0x279   :  { %3702 = vmatpush1.bf16.msra.mxu0 %v4306_v32 }
 0x27a   :  { %3784 = vmatpush1.bf16.msra.mxu1 %v4308_v33  ;;  %3703 = vmatprep.subr.bf16.mxu0 %v4315_v34 }
 0x27b   :  { %3785 = vmatprep.subr.bf16.mxu1 %v4317_v35 }
 0x27d   :  { %3704 = vmatpush1.bf16.msra.mxu0 %v4314_v38 }
 0x27e   :  { %3786 = vmatpush1.bf16.msra.mxu1 %v4316_v6  ;;  %3705 = vmatprep.subr.bf16.mxu0 %v4323_v21 }
 0x27f   :  { %3787 = vmatprep.subr.bf16.mxu1 %v4325_v39 }
 0x281   :  { %3706 = vmatpush1.bf16.msra.mxu0 %v4322_v44 }
 0x282   :  { %3788 = vmatpush1.bf16.msra.mxu1 %v4324_v45  ;;  %3707 = vmatprep.subr.bf16.mxu0 %v4331_v46 }
 0x283   :  { %3789 = vmatprep.subr.bf16.mxu1 %v4333_v47 }
 0x285   :  { %3708 = vmatpush1.bf16.msra.mxu0 %v4330_v50 }
 0x286   :  { %3790 = vmatpush1.bf16.msra.mxu1 %v4332_v53  ;;  %3709 = vmatprep.subr.bf16.mxu0 %v4339_v54 }
 0x287   :  { %3791 = vmatprep.subr.bf16.mxu1 %v4341_v55 }
 0x289   :  { %3710 = vmatpush1.bf16.msra.mxu0 %v4338_v60 }
 0x28a   :  { %3792 = vmatpush1.bf16.msra.mxu1 %v4340_v61  ;;  %3711 = vmatprep.subr.bf16.mxu0 %v4347_v62 }
 0x28b   :  { %3793 = vmatprep.subr.bf16.mxu1 %v4349_v63 }
 0x28d   :  { %3712 = vmatpush1.bf16.msra.mxu0 %v4346_v4 }
 0x28e   :  { %3794 = vmatpush1.bf16.msra.mxu1 %v4348_v8  ;;  %3713 = vmatprep.subr.bf16.mxu0 %v4355_v9 }
 0x28f   :  { %3795 = vmatprep.subr.bf16.mxu1 %v4357_v10 }
 0x291   :  { %3714 = vmatpush1.bf16.msra.mxu0 %v4354_v18 }
 0x292   :  { %3796 = vmatpush1.bf16.msra.mxu1 %v4356_v19  ;;  %3715 = vmatprep.subr.bf16.mxu0 %v4363_v20 }
 0x293   :  { %3797 = vmatprep.subr.bf16.mxu1 %v4365_v22 }
 0x295   :  { %3716 = vmatpush1.bf16.msra.mxu0 %v4362_v27 }
 0x296   :  { %3798 = vmatpush1.bf16.msra.mxu1 %v4364_v28  ;;  %3717 = vmatprep.subr.bf16.mxu0 %v4371_v29 }
 0x297   :  { %3799 = vmatprep.subr.bf16.mxu1 %v4373_v16 }
 0x299   :  { %3718 = vmatpush1.bf16.msra.mxu0 %v4370_v11 }
 0x29a   :  { %3800 = vmatpush1.bf16.msra.mxu1 %v4372_v31 }
 0x29c   :  { %3720 = vmatmul.mubr.bf16.vlgmr.msra.gmra.mrb[8].mxu0 %v6056_v25 }
 0x29d   :  { %3802 = vmatmul.mubr.bf16.vlgmr.msra.gmra.mrb[8].mxu1 %v6056_v25 }
 0x2ef   :  { %v3557_v32 = vpop.f32.mrb[4].mxu0  ;;  %v3639_v33 = vpop.f32.mrb[4].mxu1 }
 0x2f0   :  { %v3559_v34 = vpop.f32.mrb[5].mxu0  ;;  %v3641_v35 = vpop.f32.mrb[5].mxu1 }
 0x2f1   :  { %v3820_v36 = vcombine.low %v3557_v32, %v3559_v34  ;;  %v3821_v51 = vcombine.low %v3639_v33, %v3641_v35  ;;  %v3561_v5 = vpop.f32.mrb[6].mxu0  ;;  %v3643_v37 = vpop.f32.mrb[6].mxu1 }
 0x2f2   :  { %v3562_v38 = vpop.f32.mrb[7].mxu0  ;;  %v3644_v6 = vpop.f32.mrb[7].mxu1 }
 0x2f3   :  { %v3828_v21 = vrot.slane %v3820_v36, %v4963_v52  ;;  %v3835_v39 = vrot.slane %v3821_v51, %v4963_v52 }
 0x2f5   :  { %v3836_v40 = vcombine.low %v3828_v21, %v3835_v39 }
 0x2f7   :  { %3856 = vst [vmem:[%s6449_s3 + $0x10] sm:$0xff] %v3836_v40 }
 0x36f   :  { %v3721_v25 = vpop.f32.mrb[8].mxu0 }
 0x370   :  { %v3803_v41 = vpop.f32.mrb[8].mxu1  ;;  %v3723_v42 = vpop.f32.mrb[9].mxu0 }
 0x371   :  { %v3837_v43 = vcombine.low %v3721_v25, %v3723_v42  ;;  %v3805_v44 = vpop.f32.mrb[9].mxu1  ;;  %v3725_v45 = vpop.f32.mrb[10].mxu0 }
 0x372   :  { %v3838_v46 = vcombine.low %v3803_v41, %v3805_v44  ;;  %v3807_v47 = vpop.f32.mrb[10].mxu1  ;;  %v3726_v7 = vpop.f32.mrb[11].mxu0 }
 0x373   :  { %v3845_v48 = vrot.slane %v3837_v43, %v4963_v52  ;;  %v3808_v15 = vpop.f32.mrb[11].mxu1 }
 0x374   :  { %v3852_v49 = vrot.slane %v3838_v46, %v4963_v52 }
 0x376   :  { %v3853_v50 = vcombine.low %v3845_v48, %v3852_v49 }
 0x378   :  { %3857 = vst [vmem:[%s6449_s3 + $0x18] sm:$0xff] %v3853_v50 }

</bundles_post_ra>
